<compile_context>
chip_gen: v7x
topology: tpu7x:2x2x1
jax: 0.10.0
libtpu: 0.0.40
codegen_flags: <defaults>
</compile_context>

<pallas_src>
import jax
import jax.numpy as jnp
from jax.experimental import pallas as pl
from jax.experimental.pallas import tpu as pltpu

LN_EPS = 1e-5
H1, H2, H3 = 1024, 512, 256
PAD_B4 = 128                       # fc4 bias lives in a 128-wide tail chunk
SLAB_COLS = H1 + H2 + H3 + PAD_B4  # 1920


def _layernorm_relu(x, gamma, beta):
    # Single-pass LN stats: var = E[x^2] - E[x]^2 (biased, matches torch LN).
    n = x.shape[-1]
    mean = jnp.sum(x, axis=-1, keepdims=True) * (1.0 / n)
    ex2 = jnp.sum(x * x, axis=-1, keepdims=True) * (1.0 / n)
    var = ex2 - mean * mean
    xhat = (x - mean) * jax.lax.rsqrt(var + LN_EPS)
    return jnp.maximum(xhat * gamma + beta, 0.0)


def dqn_kernel(x_ref, w1_ref, w2_ref, w3_ref, w4_ref, slab_ref, out_ref):
    # x / weights are bf16 -> MXU; accumulation + LN math in f32.
    slab = slab_ref[...]                       # (3, 1920): [bias; gamma; beta]
    p1 = slab[:, 0:H1]
    p2 = slab[:, H1:H1 + H2]
    p3 = slab[:, H1 + H2:H1 + H2 + H3]
    b4 = slab[0:1, H1 + H2 + H3:H1 + H2 + H3 + out_ref.shape[-1]]

    h = jnp.dot(x_ref[...], w1_ref[...], preferred_element_type=jnp.float32)
    h = _layernorm_relu(h + p1[0:1, :], p1[1:2, :], p1[2:3, :])

    h = jnp.dot(h.astype(jnp.bfloat16), w2_ref[...],
                preferred_element_type=jnp.float32)
    h = _layernorm_relu(h + p2[0:1, :], p2[1:2, :], p2[2:3, :])

    h = jnp.dot(h.astype(jnp.bfloat16), w3_ref[...],
                preferred_element_type=jnp.float32)
    h = _layernorm_relu(h + p3[0:1, :], p3[1:2, :], p3[2:3, :])

    out_ref[...] = (jnp.dot(h.astype(jnp.bfloat16), w4_ref[...],
                            preferred_element_type=jnp.float32) + b4)


def init_params(key, n_observations, n_actions):
    """PyTorch-style init. Weights: (in, out) bf16. All biases + LN gamma/beta
    packed into one (3, 1920) f32 slab (col chunks: ln1 | ln2 | ln3 | fc4 bias)."""
    dims = [(n_observations, H1), (H1, H2), (H2, H3), (H3, n_actions)]
    ws, biases = [], []
    for fan_in, fan_out in dims:
        key, kw, kb = jax.random.split(key, 3)
        bound = 1.0 / (fan_in ** 0.5)
        w = jax.random.uniform(kw, (fan_in, fan_out), jnp.float32, -bound, bound)
        b = jax.random.uniform(kb, (fan_out,), jnp.float32, -bound, bound)
        ws.append(w.astype(jnp.bfloat16))
        biases.append(b)

    slab = jnp.zeros((3, SLAB_COLS), jnp.float32)
    col = 0
    for i, (_, fan_out) in enumerate(dims[:3]):
        slab = slab.at[0, col:col + fan_out].set(biases[i])   # bias
        slab = slab.at[1, col:col + fan_out].set(1.0)         # gamma
        # beta stays 0
        col += fan_out
    slab = slab.at[0, col:col + n_actions].set(biases[3])      # fc4 bias
    return ws, slab


def dqn_forward(x, ws, slab, n_actions, *, batch_tile=128):
    w1, w2, w3, w4 = ws
    batch, n_obs = x.shape

    # bf16-native sublane tile is 16; pad batch to 16, then to the batch tile.
    tb = min(batch_tile, max(16, ((batch + 15) // 16) * 16))
    tb = ((tb + 15) // 16) * 16
    padded = ((batch + tb - 1) // tb) * tb
    xp = jnp.pad(x, ((0, padded - batch), (0, 0))) if padded != batch else x
    xp = xp.astype(jnp.bfloat16)

    const = lambda b: (0, 0)  # weights resident: same block across all batch steps
    out = pl.pallas_call(
        dqn_kernel,
        out_shape=jax.ShapeDtypeStruct((padded, n_actions), jnp.float32),
        grid_spec=pltpu.PrefetchScalarGridSpec(
            num_scalar_prefetch=0,
            grid=(padded // tb,),
            in_specs=[
                pl.BlockSpec((tb, n_obs), lambda b: (b, 0)),   # x: streamed per tile
                pl.BlockSpec(w1.shape, const),
                pl.BlockSpec(w2.shape, const),
                pl.BlockSpec(w3.shape, const),
                pl.BlockSpec(w4.shape, const),
                pl.BlockSpec(slab.shape, const),
            ],
            out_specs=pl.BlockSpec((tb, n_actions), lambda b: (b, 0)),
        ),
        compiler_params=pltpu.CompilerParams(
            dimension_semantics=("parallel",)),
    )(xp, w1, w2, w3, w4, slab)
    return out[:batch]


def dqn_reference(x, ws, slab):
    """Pure-JAX reference doing the same math (bf16 operands, f32 accum/LN)."""
    w1, w2, w3, w4 = ws
    p1 = slab[:, 0:H1]
    p2 = slab[:, H1:H1 + H2]
    p3 = slab[:, H1 + H2:H1 + H2 + H3]
    b4 = slab[0:1, H1 + H2 + H3:H1 + H2 + H3 + w4.shape[1]]

    def dot(a, w):
        return jnp.dot(a.astype(jnp.bfloat16), w,
                       preferred_element_type=jnp.float32)

    def ln_relu(h, p):
        mean = jnp.mean(h, axis=-1, keepdims=True)
        var = jnp.mean(jnp.square(h - mean), axis=-1, keepdims=True)
        xhat = (h - mean) * jax.lax.rsqrt(var + LN_EPS)
        return jnp.maximum(xhat * p[1:2, :] + p[2:3, :], 0.0)

    h = ln_relu(dot(x, w1) + p1[0:1, :], p1)
    h = ln_relu(dot(h, w2) + p2[0:1, :], p2)
    h = ln_relu(dot(h, w3) + p3[0:1, :], p3)
    return dot(h, w4) + b4


if __name__ == "__main__":
    n_observations = 32
    n_actions = 4
    batch = 48          # small demo batch; batch_tile=16 -> 3 grid steps,
                        # exercising the resident-weight (constant index) path.

    key = jax.random.PRNGKey(0)
    key, kx = jax.random.split(key)
    x = jax.random.normal(kx, (batch, n_observations), jnp.float32)
    ws, slab = init_params(key, n_observations, n_actions)

    out = dqn_forward(x, ws, slab, n_actions, batch_tile=16)
    jax.block_until_ready(out)

    ref = dqn_reference(x, ws, slab)
    assert out.shape == (batch, n_actions)
    max_diff = jnp.max(jnp.abs(out - ref))
    assert jnp.allclose(out, ref, atol=1e-2, rtol=1e-2), \
        f"max abs diff {max_diff}"

    print("KERNEL_OK")
</pallas_src>

<mosaic_0001>
module attributes {stable_mosaic.version = 11 : i64} {
  func.func @dqn_kernel(%arg0: i32, %arg1: memref<16x32xbf16, #tpu.memory_space<vmem>>, %arg2: memref<32x1024xbf16, #tpu.memory_space<vmem>>, %arg3: memref<1024x512xbf16, #tpu.memory_space<vmem>>, %arg4: memref<512x256xbf16, #tpu.memory_space<vmem>>, %arg5: memref<256x4xbf16, #tpu.memory_space<vmem>>, %arg6: memref<3x1920xf32, #tpu.memory_space<vmem>>, %arg7: memref<16x4xf32, #tpu.memory_space<vmem>>) attributes {dimension_semantics = [#tpu.dimension_semantics<parallel>], iteration_bounds = array<i64: 3>, scalar_prefetch = 0 : i64, scratch_operands = 0 : i64, tpu.core_type = #tpu.core_type<tc>, window_params = [{transform_indices = @transform_0, window_bounds = array<i64: 16, 32>}, {pipeline_mode = #tpu.pipeline_mode<synchronous>, transform_indices = @transform_1, window_bounds = array<i64: 32, 1024>}, {pipeline_mode = #tpu.pipeline_mode<synchronous>, transform_indices = @transform_2, window_bounds = array<i64: 1024, 512>}, {pipeline_mode = #tpu.pipeline_mode<synchronous>, transform_indices = @transform_3, window_bounds = array<i64: 512, 256>}, {pipeline_mode = #tpu.pipeline_mode<synchronous>, transform_indices = @transform_4, window_bounds = array<i64: 256, 4>}, {pipeline_mode = #tpu.pipeline_mode<synchronous>, transform_indices = @transform_5, window_bounds = array<i64: 3, 1920>}, {transform_indices = @transform_6, window_bounds = array<i64: 16, 4>}]} {
    %c0 = arith.constant 0 : index
    %c0_0 = arith.constant 0 : index
    %0 = vector.load %arg6[%c0, %c0_0] : memref<3x1920xf32, #tpu.memory_space<vmem>>, vector<3x1920xf32>
    %1 = vector.extract_strided_slice %0 {offsets = [0, 0], sizes = [3, 1024], strides = [1, 1]} : vector<3x1920xf32> to vector<3x1024xf32>
    %2 = vector.extract_strided_slice %0 {offsets = [0, 1024], sizes = [3, 512], strides = [1, 1]} : vector<3x1920xf32> to vector<3x512xf32>
    %3 = vector.extract_strided_slice %0 {offsets = [0, 1536], sizes = [3, 256], strides = [1, 1]} : vector<3x1920xf32> to vector<3x256xf32>
    %4 = vector.extract_strided_slice %0 {offsets = [0, 1792], sizes = [1, 4], strides = [1, 1]} : vector<3x1920xf32> to vector<1x4xf32>
    %c0_1 = arith.constant 0 : index
    %c0_2 = arith.constant 0 : index
    %5 = vector.load %arg1[%c0_1, %c0_2] : memref<16x32xbf16, #tpu.memory_space<vmem>>, vector<16x32xbf16>
    %c0_3 = arith.constant 0 : index
    %c0_4 = arith.constant 0 : index
    %6 = vector.load %arg2[%c0_3, %c0_4] : memref<32x1024xbf16, #tpu.memory_space<vmem>>, vector<32x1024xbf16>
    %cst = arith.constant dense<0.000000e+00> : vector<16x1024xf32>
    %7 = tpu.matmul %5, %6, %cst {dimension_numbers = #tpu.dot_dimension_numbers<[1], [0], [0], [1], [0, 0, 1, 1], [], []>} : vector<16x32xbf16>, vector<32x1024xbf16>, vector<16x1024xf32> -> vector<16x1024xf32>
    %8 = vector.extract_strided_slice %1 {offsets = [0, 0], sizes = [1, 1024], strides = [1, 1]} : vector<3x1024xf32> to vector<1x1024xf32>
    %9 = vector.broadcast %8 : vector<1x1024xf32> to vector<16x1024xf32>
    %10 = arith.addf %7, %9 : vector<16x1024xf32>
    %11 = vector.extract_strided_slice %1 {offsets = [1, 0], sizes = [1, 1024], strides = [1, 1]} : vector<3x1024xf32> to vector<1x1024xf32>
    %12 = vector.extract_strided_slice %1 {offsets = [2, 0], sizes = [1, 1024], strides = [1, 1]} : vector<3x1024xf32> to vector<1x1024xf32>
    %cst_5 = arith.constant dense<0.000000e+00> : vector<16xf32>
    %13 = vector.multi_reduction <add>, %10, %cst_5 [1] : vector<16x1024xf32> to vector<16xf32>
    %14 = vector.shape_cast %13 : vector<16xf32> to vector<16x1xf32>
    %cst_6 = arith.constant 9.765625E-4 : f32
    %15 = vector.broadcast %cst_6 : f32 to vector<16x1xf32>
    %16 = arith.mulf %14, %15 : vector<16x1xf32>
    %17 = arith.mulf %10, %10 : vector<16x1024xf32>
    %cst_7 = arith.constant dense<0.000000e+00> : vector<16xf32>
    %18 = vector.multi_reduction <add>, %17, %cst_7 [1] : vector<16x1024xf32> to vector<16xf32>
    %19 = vector.shape_cast %18 : vector<16xf32> to vector<16x1xf32>
    %cst_8 = arith.constant 9.765625E-4 : f32
    %20 = vector.broadcast %cst_8 : f32 to vector<16x1xf32>
    %21 = arith.mulf %19, %20 : vector<16x1xf32>
    %22 = arith.mulf %16, %16 : vector<16x1xf32>
    %23 = arith.subf %21, %22 : vector<16x1xf32>
    %24 = vector.broadcast %16 : vector<16x1xf32> to vector<16x1024xf32>
    %25 = arith.subf %10, %24 : vector<16x1024xf32>
    %cst_9 = arith.constant 9.99999974E-6 : f32
    %26 = vector.broadcast %cst_9 : f32 to vector<16x1xf32>
    %27 = arith.addf %23, %26 : vector<16x1xf32>
    %28 = math.rsqrt %27 : vector<16x1xf32>
    %29 = vector.broadcast %28 : vector<16x1xf32> to vector<16x1024xf32>
    %30 = arith.mulf %25, %29 : vector<16x1024xf32>
    %31 = vector.broadcast %11 : vector<1x1024xf32> to vector<16x1024xf32>
    %32 = arith.mulf %30, %31 : vector<16x1024xf32>
    %33 = vector.broadcast %12 : vector<1x1024xf32> to vector<16x1024xf32>
    %34 = arith.addf %32, %33 : vector<16x1024xf32>
    %cst_10 = arith.constant 0.000000e+00 : f32
    %35 = vector.broadcast %cst_10 : f32 to vector<16x1024xf32>
    %36 = arith.maximumf %34, %35 : vector<16x1024xf32>
    %37 = arith.truncf %36 : vector<16x1024xf32> to vector<16x1024xbf16>
    %c0_11 = arith.constant 0 : index
    %c0_12 = arith.constant 0 : index
    %38 = vector.load %arg3[%c0_11, %c0_12] : memref<1024x512xbf16, #tpu.memory_space<vmem>>, vector<1024x512xbf16>
    %cst_13 = arith.constant dense<0.000000e+00> : vector<16x512xf32>
    %39 = tpu.matmul %37, %38, %cst_13 {dimension_numbers = #tpu.dot_dimension_numbers<[1], [0], [0], [1], [0, 0, 1, 1], [], []>} : vector<16x1024xbf16>, vector<1024x512xbf16>, vector<16x512xf32> -> vector<16x512xf32>
    %40 = vector.extract_strided_slice %2 {offsets = [0, 0], sizes = [1, 512], strides = [1, 1]} : vector<3x512xf32> to vector<1x512xf32>
    %41 = vector.broadcast %40 : vector<1x512xf32> to vector<16x512xf32>
    %42 = arith.addf %39, %41 : vector<16x512xf32>
    %43 = vector.extract_strided_slice %2 {offsets = [1, 0], sizes = [1, 512], strides = [1, 1]} : vector<3x512xf32> to vector<1x512xf32>
    %44 = vector.extract_strided_slice %2 {offsets = [2, 0], sizes = [1, 512], strides = [1, 1]} : vector<3x512xf32> to vector<1x512xf32>
    %cst_14 = arith.constant dense<0.000000e+00> : vector<16xf32>
    %45 = vector.multi_reduction <add>, %42, %cst_14 [1] : vector<16x512xf32> to vector<16xf32>
    %46 = vector.shape_cast %45 : vector<16xf32> to vector<16x1xf32>
    %cst_15 = arith.constant 0.001953125 : f32
    %47 = vector.broadcast %cst_15 : f32 to vector<16x1xf32>
    %48 = arith.mulf %46, %47 : vector<16x1xf32>
    %49 = arith.mulf %42, %42 : vector<16x512xf32>
    %cst_16 = arith.constant dense<0.000000e+00> : vector<16xf32>
    %50 = vector.multi_reduction <add>, %49, %cst_16 [1] : vector<16x512xf32> to vector<16xf32>
    %51 = vector.shape_cast %50 : vector<16xf32> to vector<16x1xf32>
    %cst_17 = arith.constant 0.001953125 : f32
    %52 = vector.broadcast %cst_17 : f32 to vector<16x1xf32>
    %53 = arith.mulf %51, %52 : vector<16x1xf32>
    %54 = arith.mulf %48, %48 : vector<16x1xf32>
    %55 = arith.subf %53, %54 : vector<16x1xf32>
    %56 = vector.broadcast %48 : vector<16x1xf32> to vector<16x512xf32>
    %57 = arith.subf %42, %56 : vector<16x512xf32>
    %cst_18 = arith.constant 9.99999974E-6 : f32
    %58 = vector.broadcast %cst_18 : f32 to vector<16x1xf32>
    %59 = arith.addf %55, %58 : vector<16x1xf32>
    %60 = math.rsqrt %59 : vector<16x1xf32>
    %61 = vector.broadcast %60 : vector<16x1xf32> to vector<16x512xf32>
    %62 = arith.mulf %57, %61 : vector<16x512xf32>
    %63 = vector.broadcast %43 : vector<1x512xf32> to vector<16x512xf32>
    %64 = arith.mulf %62, %63 : vector<16x512xf32>
    %65 = vector.broadcast %44 : vector<1x512xf32> to vector<16x512xf32>
    %66 = arith.addf %64, %65 : vector<16x512xf32>
    %cst_19 = arith.constant 0.000000e+00 : f32
    %67 = vector.broadcast %cst_19 : f32 to vector<16x512xf32>
    %68 = arith.maximumf %66, %67 : vector<16x512xf32>
    %69 = arith.truncf %68 : vector<16x512xf32> to vector<16x512xbf16>
    %c0_20 = arith.constant 0 : index
    %c0_21 = arith.constant 0 : index
    %70 = vector.load %arg4[%c0_20, %c0_21] : memref<512x256xbf16, #tpu.memory_space<vmem>>, vector<512x256xbf16>
    %cst_22 = arith.constant dense<0.000000e+00> : vector<16x256xf32>
    %71 = tpu.matmul %69, %70, %cst_22 {dimension_numbers = #tpu.dot_dimension_numbers<[1], [0], [0], [1], [0, 0, 1, 1], [], []>} : vector<16x512xbf16>, vector<512x256xbf16>, vector<16x256xf32> -> vector<16x256xf32>
    %72 = vector.extract_strided_slice %3 {offsets = [0, 0], sizes = [1, 256], strides = [1, 1]} : vector<3x256xf32> to vector<1x256xf32>
    %73 = vector.broadcast %72 : vector<1x256xf32> to vector<16x256xf32>
    %74 = arith.addf %71, %73 : vector<16x256xf32>
    %75 = vector.extract_strided_slice %3 {offsets = [1, 0], sizes = [1, 256], strides = [1, 1]} : vector<3x256xf32> to vector<1x256xf32>
    %76 = vector.extract_strided_slice %3 {offsets = [2, 0], sizes = [1, 256], strides = [1, 1]} : vector<3x256xf32> to vector<1x256xf32>
    %cst_23 = arith.constant dense<0.000000e+00> : vector<16xf32>
    %77 = vector.multi_reduction <add>, %74, %cst_23 [1] : vector<16x256xf32> to vector<16xf32>
    %78 = vector.shape_cast %77 : vector<16xf32> to vector<16x1xf32>
    %cst_24 = arith.constant 3.906250e-03 : f32
    %79 = vector.broadcast %cst_24 : f32 to vector<16x1xf32>
    %80 = arith.mulf %78, %79 : vector<16x1xf32>
    %81 = arith.mulf %74, %74 : vector<16x256xf32>
    %cst_25 = arith.constant dense<0.000000e+00> : vector<16xf32>
    %82 = vector.multi_reduction <add>, %81, %cst_25 [1] : vector<16x256xf32> to vector<16xf32>
    %83 = vector.shape_cast %82 : vector<16xf32> to vector<16x1xf32>
    %cst_26 = arith.constant 3.906250e-03 : f32
    %84 = vector.broadcast %cst_26 : f32 to vector<16x1xf32>
    %85 = arith.mulf %83, %84 : vector<16x1xf32>
    %86 = arith.mulf %80, %80 : vector<16x1xf32>
    %87 = arith.subf %85, %86 : vector<16x1xf32>
    %88 = vector.broadcast %80 : vector<16x1xf32> to vector<16x256xf32>
    %89 = arith.subf %74, %88 : vector<16x256xf32>
    %cst_27 = arith.constant 9.99999974E-6 : f32
    %90 = vector.broadcast %cst_27 : f32 to vector<16x1xf32>
    %91 = arith.addf %87, %90 : vector<16x1xf32>
    %92 = math.rsqrt %91 : vector<16x1xf32>
    %93 = vector.broadcast %92 : vector<16x1xf32> to vector<16x256xf32>
    %94 = arith.mulf %89, %93 : vector<16x256xf32>
    %95 = vector.broadcast %75 : vector<1x256xf32> to vector<16x256xf32>
    %96 = arith.mulf %94, %95 : vector<16x256xf32>
    %97 = vector.broadcast %76 : vector<1x256xf32> to vector<16x256xf32>
    %98 = arith.addf %96, %97 : vector<16x256xf32>
    %cst_28 = arith.constant 0.000000e+00 : f32
    %99 = vector.broadcast %cst_28 : f32 to vector<16x256xf32>
    %100 = arith.maximumf %98, %99 : vector<16x256xf32>
    %101 = arith.truncf %100 : vector<16x256xf32> to vector<16x256xbf16>
    %c0_29 = arith.constant 0 : index
    %c0_30 = arith.constant 0 : index
    %102 = vector.load %arg5[%c0_29, %c0_30] : memref<256x4xbf16, #tpu.memory_space<vmem>>, vector<256x4xbf16>
    %cst_31 = arith.constant dense<0.000000e+00> : vector<16x4xf32>
    %103 = tpu.matmul %101, %102, %cst_31 {dimension_numbers = #tpu.dot_dimension_numbers<[1], [0], [0], [1], [0, 0, 1, 1], [], []>} : vector<16x256xbf16>, vector<256x4xbf16>, vector<16x4xf32> -> vector<16x4xf32>
    %104 = vector.broadcast %4 : vector<1x4xf32> to vector<16x4xf32>
    %105 = arith.addf %103, %104 : vector<16x4xf32>
    %c0_32 = arith.constant 0 : index
    %c0_33 = arith.constant 0 : index
    %106 = vector.load %arg7[%c0_32, %c0_33] : memref<16x4xf32, #tpu.memory_space<vmem>>, vector<16x4xf32>
    tpu.vector_store %arg7[%c0_32, %c0_33], %105 {strides = array<i32>} : memref<16x4xf32, #tpu.memory_space<vmem>>, vector<16x4xf32>,
    return
  }
  func.func @transform_0(%arg0: i32) -> (i32, i32) {
    %c0_i32 = arith.constant 0 : i32
    %c0_i32_0 = arith.constant 0 : i32
    return %arg0, %c0_i32 : i32, i32
  }
  func.func @transform_1(%arg0: i32) -> (i32, i32) {
    %c0_i32 = arith.constant 0 : i32
    %c0_i32_0 = arith.constant 0 : i32
    %c0_i32_1 = arith.constant 0 : i32
    return %c0_i32, %c0_i32_0 : i32, i32
  }
  func.func @transform_2(%arg0: i32) -> (i32, i32) {
    %c0_i32 = arith.constant 0 : i32
    %c0_i32_0 = arith.constant 0 : i32
    %c0_i32_1 = arith.constant 0 : i32
    return %c0_i32, %c0_i32_0 : i32, i32
  }
  func.func @transform_3(%arg0: i32) -> (i32, i32) {
    %c0_i32 = arith.constant 0 : i32
    %c0_i32_0 = arith.constant 0 : i32
    %c0_i32_1 = arith.constant 0 : i32
    return %c0_i32, %c0_i32_0 : i32, i32
  }
  func.func @transform_4(%arg0: i32) -> (i32, i32) {
    %c0_i32 = arith.constant 0 : i32
    %c0_i32_0 = arith.constant 0 : i32
    %c0_i32_1 = arith.constant 0 : i32
    return %c0_i32, %c0_i32_0 : i32, i32
  }
  func.func @transform_5(%arg0: i32) -> (i32, i32) {
    %c0_i32 = arith.constant 0 : i32
    %c0_i32_0 = arith.constant 0 : i32
    %c0_i32_1 = arith.constant 0 : i32
    return %c0_i32, %c0_i32_0 : i32, i32
  }
  func.func @transform_6(%arg0: i32) -> (i32, i32) {
    %c0_i32 = arith.constant 0 : i32
    %c0_i32_0 = arith.constant 0 : i32
    return %arg0, %c0_i32 : i32, i32
  }
}

</mosaic_0001>

<bundles_post_ra>
// kernel: tpu_custom_call.1
= control target key start
LH: loop header
LB: loop body
LE: loop exit
PB: predicated region body
PF: predicated region fallthrough
CT: control target
= control target key end

     0   :  { %11 = vsyncpa [#allocation3], 0  ;;  %s5587_s0 = inlined_call_operand.vmem [shape: bf16[48,32], index: 0, kind: input, shape index: {}]   ;;  %s5588_s1 = inlined_call_operand.vmem [shape: bf16[32,1024], index: 1, kind: input, shape index: {}]   ;;  %s5589_s2 = inlined_call_operand.hbm [shape: bf16[1024,512], index: 2, kind: input, shape index: {}]   ;;  %s5590_s3 = inlined_call_operand.hbm [shape: bf16[512,256], index: 3, kind: input, shape index: {}]   ;;  %s5591_s4 = inlined_call_operand.vmem [shape: bf16[256,4], index: 4, kind: input, shape index: {}]   ;;  %s5592_s5 = inlined_call_operand.vmem [shape: f32[3,1920], index: 5, kind: input, shape index: {}]   ;;  %s5593_s6 = inlined_call_operand.vmem [shape: f32[48,4], index: 6, kind: output, shape index: {}]  }
   0x1   :  { %12 = vsyncpa [#allocation5], 0  ;;  %s4939_s21 = smov 0  }
   0x2 LB: > { %s4897_s22 = smov [#allocation2]   ;;  %s3848_s24 = sadd.s32 4294967295, %s4895_s21   ;;  %s4895_s21 = sphi %s4939_s21, %s18_s21  }
   0x3   : > { %s195_s23 = sshll.u32 %s4897_s22, 4  ;;  %p3850_p0 = scmp.ge.s32.totalorder %s4895_s21, 1  ;;  %s196_s23 = int_to_ptr.vmem [resolvable:$true] %s195_s23 }
   0x4   : > { %p180_p1 = scmp.lt.s32.totalorder %s4895_s21, 4  ;;  %p4953_p3 = scmp.eq.s32.totalorder %s3848_s24, 0 }
   0x5   : > { %s4898_s27 = smov [#allocation4]   ;;  %s4825_s8 = scalar_lea.hbm %s5589_s2, 32768 }
   0x6   : > { %p4947_p2 = pnand %p3850_p0, %p180_p1  ;;  %s208_s28 = sshll.u32 %s4898_s27, 4  ;;  %s4965_s28 = int_to_ptr.vmem [resolvable:$true] %s208_s28 }
   0x7   : > { %s5598_s26 = scalar_select %p4953_p3, 1, 0 }
   0x8   : > { %s5597_s25 = scalar_select %p4947_p2, 1, 0 }
   0x9   : > { %p4290_p4 = pneg %p4947_p2  ;;  %p4826_p6 = scmp.ne.s32.totalorder %s5589_s2, %s4825_s8 }
   0xa   : > { %p4832_p10 = scmp.lt.u32.totalorder %s4825_s8, %s5589_s2 }
   0xb   : > { %p4961_p5 = pnand %p4953_p3, %p4290_p4 }
   0xd   : > { %p4827_p7 = pneg %p4961_p5 }
   0xf   : > { %p4828_p8 = pnand %p4827_p7, %p4826_p6 }
  0x11   : > { %p4829_p9 = pneg %p4828_p8 }
  0x13   : > { %p4834_p11 = pnand %p4832_p10, %p4829_p9 }
  0x15   : > { %4837 = shalt.err (!%p4834_p11)
}
  0x16   : > { %s4838_s13 = scalar_lea.vmem %s196_s23, 32768  ;;  %p4846_p1 = scmp.lt.s32.totalorder %s196_s23, %s196_s23 }
  0x17   : > { %p4839_p12 = scmp.ne.s32.totalorder %s196_s23, %s4838_s13  ;;  %p4847_p4 = scmp.lt.s32.totalorder %s4838_s13, %s4838_s13 }
  0x19   : > { %p4841_p13 = pnand %p4839_p12, %p4827_p7  ;;  %p4848_p3 = por %p4847_p4, %p4846_p1 }
  0x1b   : > { %p4842_p0 = pneg %p4841_p13 }
  0x1d   : > { %p4849_p2 = pnand %p4848_p3, %p4842_p0 }
  0x1f   : > { %4852 = shalt.err (!%p4849_p2)
}
  0x20   : > { %s4899_s14 = smov 256   ;;  %s4900_s15 = smov 16  }
  0x21   : > { %4293 = dma.hbm_to_vmem [thread:$0]  (!%p4961_p5), %s5589_s2, 32768, %s196_s23, [#allocation3], %s4899_s14, %s4899_s14, %s4900_s15  }
  0x22   : > { %s4853_s20 = scalar_lea.hbm %s5590_s3, 8192 }
  0x23   : > { %p4854_p6 = scmp.ne.s32.totalorder %s5590_s3, %s4853_s20  ;;  %p4860_p8 = scmp.lt.u32.totalorder %s4853_s20, %s5590_s3 }
  0x25   : > { %p4856_p2 = pnand %p4854_p6, %p4827_p7 }
  0x27   : > { %p4857_p3 = pneg %p4856_p2 }
  0x29   : > { %p4862_p9 = pnand %p4860_p8, %p4857_p3 }
  0x2b   : > { %4865 = shalt.err (!%p4862_p9)
}
  0x2c   : > { %s4866_s23 = scalar_lea.vmem %s4965_s28, 8192  ;;  %p4874_p13 = scmp.lt.s32.totalorder %s4965_s28, %s4965_s28 }
  0x2d   : > { %p4867_p10 = scmp.ne.s32.totalorder %s4965_s28, %s4866_s23  ;;  %p4875_p0 = scmp.lt.s32.totalorder %s4866_s23, %s4866_s23 }
  0x2f   : > { %p4869_p11 = pnand %p4867_p10, %p4827_p7  ;;  %p4876_p1 = por %p4875_p0, %p4874_p13 }
  0x31   : > { %p4870_p12 = pneg %p4869_p11 }
  0x33   : > { %p4877_p4 = pnand %p4876_p1, %p4870_p12 }
  0x35   : > { %4880 = shalt.err (!%p4877_p4)
}
  0x36   : > { %s4901_s8 = smov 128   ;;  %s4902_s9 = smov 8  }
  0x37   : > { %4296 = dma.hbm_to_vmem [thread:$0]  (!%p4961_p5), %s5590_s3, 8192, %s4965_s28, [#allocation5], %s4901_s8, %s4901_s8, %s4902_s9  }
  0x38   : > { %p5600_p6 = scmp.ne.s32.totalorder %s5597_s25, 0 }
  0x39   : > { %p5601_p7 = scmp.ne.s32.totalorder (!%p5600_p6), %s5598_s26, 0 }
  0x3a   : > { %239 = sbr.rel (%p5600_p6) target bundleno = 1826 (0x722), region = 44 }
  0x41   : > { %4886 = dma.done.wait (%p5601_p7), [#allocation3], 32768  }
  0x42   : > { %4888 = vsyncadd (%p5601_p7), [#allocation3], 4294934528 }
  0x43   : > { %4890 = dma.done.wait (%p5601_p7), [#allocation5], 8192  }
  0x44   : > { %4892 = vsyncadd (%p5601_p7), [#allocation5], 4294959104  ;;  %s3857_s29 = sshll.u32 %s3848_s24, 1  ;;  %v4903_v0 = vmov 0   ;;  %v296_v1 = vld [vmem:[%s5588_s1] sm:$0xff]  ;;  %v297_v8 = vld [vmem:[%s5588_s1 + $0x8] sm:$0xff] }
  0x45   : > { %509 = vmatprep.mubr.bf16.mxu0 %v4903_v0  ;;  %p274_p5 = scmp.lt.s32.totalorder %s3857_s29, 5  ;;  %v300_v2 = vld [vmem:[%s5588_s1 + $0x20] sm:$0xff]  ;;  %v301_v9 = vld [vmem:[%s5588_s1 + $0x28] sm:$0xff]  ;;  %vm473_vm0 = vcmask 261120   ;;  %v298_v16 = vld [vmem:[%s5588_s1 + $0x10] sm:$0xff]  ;;  %vm3767_vm1 = vcmask 31744  }
  0x46   : > { %v304_v3 = vld [vmem:[%s5588_s1 + $0x40] sm:$0xff]  ;;  %v3863_v4 = vcombine.high %v296_v1, %v300_v2  ;;  %v3862_v5 = vcombine.low %v296_v1, %v300_v2  ;;  %v3865_v12 = vcombine.high %v297_v8, %v301_v9  ;;  %v305_v13 = vld [vmem:[%s5588_s1 + $0x48] sm:$0xff]  ;;  %v3864_v15 = vcombine.low %v297_v8, %v301_v9  ;;  %v302_v17 = vld [vmem:[%s5588_s1 + $0x30] sm:$0xff] }
  0x47   : > { %s5603_s29 = smov (!%p274_p5, %s3857_s29), 5  ;;  %v308_v6 = vld [vmem:[%s5588_s1 + $0x60] sm:$0xff]  ;;  %v309_v14 = vld [vmem:[%s5588_s1 + $0x68] sm:$0xff]  ;;  %v306_v20 = vld [vmem:[%s5588_s1 + $0x50] sm:$0xff]  ;;  %v3867_v22 = vcombine.high %v298_v16, %v302_v17  ;;  %v3866_v23 = vcombine.low %v298_v16, %v302_v17  ;;  %v316_v2 = vlaneseq }
  0x48   : > { %s3858_s25 = sshll.u32 %s5603_s29, 2  ;;  %v3871_v7 = vcombine.high %v304_v3, %v308_v6  ;;  %477 = vmatprep.subr.bf16.mxu0 %v3863_v4  ;;  %v3870_v10 = vcombine.low %v304_v3, %v308_v6  ;;  %v3873_v18 = vcombine.high %v305_v13, %v309_v14  ;;  %v3872_v19 = vcombine.low %v305_v13, %v309_v14  ;;  %v310_v21 = vld [vmem:[%s5588_s1 + $0x70] sm:$0xff]  ;;  %v299_v24 = vld [vmem:[%s5588_s1 + $0x18] sm:$0xff]  ;;  %v5095_v6 = vld [vmem:[%s5592_s5] sm:$0x77]  ;;  %s3860_s8 = sshll.u32 %s5603_s29, 3 }
  0x49   : > { %s277_s17 = scalar_lea.vmem %s5587_s0, %s3858_s25  ;;  %478 = vmatpush1.bf16.msra.mxu0 %v3862_v5  ;;  %v303_v25 = vld [vmem:[%s5588_s1 + $0x38] sm:$0xff]  ;;  %v3875_v26 = vcombine.high %v306_v20, %v310_v21  ;;  %v3874_v27 = vcombine.low %v306_v20, %v310_v21  ;;  %v5084_v3 = vshrl.u32 %v316_v2, 7  ;;  %s283_s11 = scalar_lea.vmem %s5593_s6, %s3860_s8 }
  0x4a   : > { %479 = vmatprep.subr.bf16.mxu0 %v3871_v7  ;;  %v4316_v11 = vld [vmem:[%s277_s17] sm:$0xff]   ;;  %v307_v28 = vld [vmem:[%s5588_s1 + $0x58] sm:$0xff]  ;;  %v3869_v30 = vcombine.high %v299_v24, %v303_v25  ;;  %v3868_v31 = vcombine.low %v299_v24, %v303_v25  ;;  %v5100_v7 = vld [vmem:[%s5592_s5 + $0x8] sm:$0x77] }
  0x4b   : > { %v311_v29 = vld [vmem:[%s5588_s1 + $0x78] sm:$0xff]  ;;  %v5087_v4 = vsub.s32 0, %v5084_v3  ;;  %v5090_v5 = vsub.s32 4, %v5084_v3 }
  0x4c   : > { %v3877_v32 = vcombine.high %v307_v28, %v311_v29  ;;  %v3876_v33 = vcombine.low %v307_v28, %v311_v29  ;;  %v4317_v34 = vld [vmem:[#allocation2 + $0x4] ss:$16 sps:$4 sm:$0xff]   ;;  %v4319_v35 = vld [vmem:[#allocation2 + $0x200] ss:$16 sps:$4 sm:$0xff]  }
  0x4d   : > { %480 = vmatpush1.bf16.msra.mxu0 %v3870_v10  ;;  %v4321_v36 = vld [vmem:[#allocation2 + $0x204] ss:$16 sps:$4 sm:$0xff]   ;;  %v4322_v37 = vld [vmem:[#allocation2] ss:$16 sps:$4 sm:$0xff]   ;;  %2519 = vmatprep.subr.bf16.mxu1 %v4317_v34  ;;  %v319_v8 = vrot.slane %v5095_v6, %v5087_v4  ;;  %v323_v9 = vrot.slane %v5095_v6, %v5090_v5 }
  0x4e   : > { %520 = vmatprep.subr.bf16.mxu0 %v3865_v12  ;;  %v4323_v38 = vld [vmem:[#allocation2 + $0x24] ss:$16 sps:$4 sm:$0xff]   ;;  %2520 = vmatpush1.bf16.msra.mxu1 %v4322_v37  ;;  %v4325_v40 = vld [vmem:[#allocation2 + $0x220] ss:$16 sps:$4 sm:$0xff]   ;;  %v327_v12 = vrot.slane %v5100_v7, %v5087_v4 }
  0x4f   : > { %v4327_v39 = vld [vmem:[#allocation2 + $0x224] ss:$16 sps:$4 sm:$0xff]   ;;  %v4328_v41 = vld [vmem:[#allocation2 + $0x20] ss:$16 sps:$4 sm:$0xff]   ;;  %2521 = vmatprep.subr.bf16.mxu1 %v4323_v38  ;;  %v359_v14 = vrot.slane %v319_v8, %v5087_v4 }
  0x50   : > { %3878 = vmatmul.mubr.msk.bf16.vlgmr.msra.gmra.mrb[0].mxu0 %vm473_vm0, %v4316_v11  ;;  %v4329_v42 = vld [vmem:[#allocation2 + $0x44] ss:$16 sps:$4 sm:$0xff]   ;;  %v4331_v44 = vld [vmem:[#allocation2 + $0x240] ss:$16 sps:$4 sm:$0xff]   ;;  %v367_v17 = vrot.slane %v327_v12, %v5087_v4 }
  0x51   : > { %521 = vmatpush1.bf16.msra.mxu0 %v3864_v15  ;;  %552 = vmatprep.mubr.bf16.mxu0 %v4903_v0  ;;  %v4333_v43 = vld [vmem:[#allocation2 + $0x244] ss:$16 sps:$4 sm:$0xff]   ;;  %v4334_v45 = vld [vmem:[#allocation2 + $0x40] ss:$16 sps:$4 sm:$0xff]   ;;  %v363_v15 = vrot.slane %v323_v9, %v5087_v4 }
  0x52   : > { %522 = vmatprep.subr.bf16.mxu0 %v3873_v18  ;;  %2522 = vmatpush1.bf16.msra.mxu1 %v4328_v41  ;;  %v4335_v46 = vld [vmem:[#allocation2 + $0x64] ss:$16 sps:$4 sm:$0xff]   ;;  %v4337_v48 = vld [vmem:[#allocation2 + $0x260] ss:$16 sps:$4 sm:$0xff]   ;;  %v331_v18 = vrot.slane %v5100_v7, %v5090_v5 }
  0x53   : > { %2523 = vmatprep.subr.bf16.mxu1 %v4329_v42  ;;  %v4339_v47 = vld [vmem:[#allocation2 + $0x264] ss:$16 sps:$4 sm:$0xff]   ;;  %v4340_v49 = vld [vmem:[#allocation2 + $0x60] ss:$16 sps:$4 sm:$0xff]  }
  0x54   : > { %v4341_v50 = vld [vmem:[#allocation2 + $0x84] ss:$16 sps:$4 sm:$0xff]   ;;  %v4343_v52 = vld [vmem:[#allocation2 + $0x280] ss:$16 sps:$4 sm:$0xff]  }
  0x55   : > { %523 = vmatpush1.bf16.msra.mxu0 %v3872_v19  ;;  %v4345_v51 = vld [vmem:[#allocation2 + $0x284] ss:$16 sps:$4 sm:$0xff]   ;;  %v4346_v53 = vld [vmem:[#allocation2 + $0x80] ss:$16 sps:$4 sm:$0xff]   ;;  %v5116_v19 = vld [vmem:[%s5592_s5 + $0x10] sm:$0x77] }
  0x56   : > { %563 = vmatprep.subr.bf16.mxu0 %v3867_v22  ;;  %2524 = vmatpush1.bf16.msra.mxu1 %v4334_v45  ;;  %v4347_v54 = vld [vmem:[#allocation2 + $0xa4] ss:$16 sps:$4 sm:$0xff]   ;;  %v4349_v56 = vld [vmem:[#allocation2 + $0x2a0] ss:$16 sps:$4 sm:$0xff]   ;;  %v335_v28 = vrot.slane %v5116_v19, %v5087_v4  ;;  %v339_v34 = vrot.slane %v5116_v19, %v5090_v5 }
  0x57   : > { %2525 = vmatprep.subr.bf16.mxu1 %v4335_v46  ;;  %v4351_v55 = vld [vmem:[#allocation2 + $0x2a4] ss:$16 sps:$4 sm:$0xff]   ;;  %v4352_v57 = vld [vmem:[#allocation2 + $0xa0] ss:$16 sps:$4 sm:$0xff]  }
  0x58   : > { %3879 = vmatmul.mubr.msk.bf16.vlgmr.msra.gmra.mrb[4].mxu0 %vm473_vm0, %v4316_v11  ;;  %v4353_v58 = vld [vmem:[#allocation2 + $0xc4] ss:$16 sps:$4 sm:$0xff]   ;;  %v4355_v60 = vld [vmem:[#allocation2 + $0x2c0] ss:$16 sps:$4 sm:$0xff]  }
  0x59   : > { %564 = vmatpush1.bf16.msra.mxu0 %v3866_v23  ;;  %595 = vmatprep.mubr.bf16.mxu0 %v4903_v0  ;;  %v4357_v59 = vld [vmem:[#allocation2 + $0x2c4] ss:$16 sps:$4 sm:$0xff]   ;;  %v4358_v61 = vld [vmem:[#allocation2 + $0xc0] ss:$16 sps:$4 sm:$0xff]  }
  0x5a   : > { %565 = vmatprep.subr.bf16.mxu0 %v3875_v26  ;;  %2526 = vmatpush1.bf16.msra.mxu1 %v4340_v49  ;;  %v4359_v62 = vld [vmem:[#allocation2 + $0xe4] ss:$16 sps:$4 sm:$0xff]   ;;  %v4364_v1 = vld [vmem:[#allocation2 + $0xe0] ss:$16 sps:$4 sm:$0xff]   ;;  %v371_v26 = vrot.slane %v331_v18, %v5087_v4 }
  0x5b   : > { %2527 = vmatprep.subr.bf16.mxu1 %v4341_v50  ;;  %v4363_v63 = vld [vmem:[#allocation2 + $0x2e4] ss:$16 sps:$4 sm:$0xff]  }
  0x5d   : > { %566 = vmatpush1.bf16.msra.mxu0 %v3874_v27 }
  0x5e   : > { %606 = vmatprep.subr.bf16.mxu0 %v3869_v30  ;;  %2528 = vmatpush1.bf16.msra.mxu1 %v4346_v53 }
  0x5f   : > { %2529 = vmatprep.subr.bf16.mxu1 %v4347_v54 }
  0x60   : > { %3880 = vmatmul.mubr.msk.bf16.vlgmr.msra.gmra.mrb[8].mxu0 %vm473_vm0, %v4316_v11 }
  0x61   : > { %607 = vmatpush1.bf16.msra.mxu0 %v3868_v31  ;;  %638 = vmatprep.mubr.bf16.mxu0 %v4903_v0  ;;  %v4361_v0 = vld [vmem:[#allocation2 + $0x2e0] ss:$16 sps:$4 sm:$0xff]  }
  0x62   : > { %608 = vmatprep.subr.bf16.mxu0 %v3877_v32  ;;  %2530 = vmatpush1.bf16.msra.mxu1 %v4352_v57 }
  0x63   : > { %2531 = vmatprep.subr.bf16.mxu1 %v4353_v58 }
  0x65   : > { %609 = vmatpush1.bf16.msra.mxu0 %v3876_v33 }
  0x66   : > { %2562 = vmatprep.subr.bf16.mxu0 %v4321_v36  ;;  %2532 = vmatpush1.bf16.msra.mxu1 %v4358_v61 }
  0x67   : > { %2533 = vmatprep.subr.bf16.mxu1 %v4359_v62 }
  0x68   : > { %3881 = vmatmul.mubr.msk.bf16.vlgmr.msra.gmra.mrb[12].mxu0 %vm473_vm0, %v4316_v11 }
  0x69   : > { %2563 = vmatpush1.bf16.msra.mxu0 %v4319_v35 }
  0x6a   : > { %2564 = vmatprep.subr.bf16.mxu0 %v4327_v39  ;;  %2534 = vmatpush1.bf16.msra.mxu1 %v4364_v1 }
  0x6d   : > { %2565 = vmatpush1.bf16.msra.mxu0 %v4325_v40  ;;  %v375_v40 = vrot.slane %v335_v28, %v5087_v4 }
  0x6e   : > { %2566 = vmatprep.subr.bf16.mxu0 %v4333_v43 }
  0x71   : > { %2567 = vmatpush1.bf16.msra.mxu0 %v4331_v44  ;;  %v5159_v44 = vld [vmem:[%s5592_s5 + $0x18] sm:$0x77] }
  0x72   : > { %2568 = vmatprep.subr.bf16.mxu0 %v4339_v47  ;;  %v379_v47 = vrot.slane %v339_v34, %v5087_v4 }
  0x75   : > { %2569 = vmatpush1.bf16.msra.mxu0 %v4337_v48 }
  0x76   : > { %2570 = vmatprep.subr.bf16.mxu0 %v4345_v51 }
  0x79   : > { %2571 = vmatpush1.bf16.msra.mxu0 %v4343_v52 }
  0x7a   : > { %2572 = vmatprep.subr.bf16.mxu0 %v4351_v55  ;;  %v343_v55 = vrot.slane %v5159_v44, %v5087_v4 }
  0x7d   : > { %2573 = vmatpush1.bf16.msra.mxu0 %v4349_v56 }
  0x7e   : > { %2574 = vmatprep.subr.bf16.mxu0 %v4357_v59  ;;  %v347_v59 = vrot.slane %v5159_v44, %v5090_v5 }
  0x81   : > { %2575 = vmatpush1.bf16.msra.mxu0 %v4355_v60 }
  0x82   : > { %2576 = vmatprep.subr.bf16.mxu0 %v4363_v63 }
  0x85   : > { %2577 = vmatpush1.bf16.msra.mxu0 %v4361_v0 }
 0x123   : > { %v511_v10 = vpop.f32.mrb[0].mxu0 }
 0x124   : > { %v513_v11 = vpop.f32.mrb[1].mxu0  ;;  %v5118_v20 = vadd.f32 %v511_v10, %v359_v14 }
 0x125   : > { %v515_v13 = vpop.f32.mrb[2].mxu0  ;;  %v5120_v21 = vadd.f32 %v513_v11, %v363_v15  ;;  %v383_v11 = vrot.slane %v343_v55, %v5087_v4  ;;  %v4369_v55 = vld [vmem:[#allocation2 + $0x304] ss:$16 sps:$4 sm:$0xff]  }
 0x126   : > { %v517_v16 = vpop.f32.mrb[3].mxu0  ;;  %v5122_v22 = vadd.f32 %v515_v13, %v359_v14  ;;  %v669_v30 = vmul.f32 %v5118_v20, %v5118_v20  ;;  %v387_v14 = vrot.slane %v347_v59, %v5087_v4  ;;  %2578 = vmatprep.subr.bf16.mxu0 %v4369_v55  ;;  %v4375_v59 = vld [vmem:[#allocation2 + $0x324] ss:$16 sps:$4 sm:$0xff]   ;;  %v5227_v55 = vsub.s32 6, %v5084_v3 }
 0x127   : > { %v5124_v23 = vadd.f32 %v517_v16, %v363_v15  ;;  %v670_v31 = vmul.f32 %v5120_v21, %v5120_v21  ;;  %v649_v37 = vadd.f32 %v5120_v21, %v5118_v20 }
 0x128   : > { %v677_v35 = vmul.f32 %v5122_v22, %v5122_v22 }
 0x129   : > { %v678_v36 = vmul.f32 %v5124_v23, %v5124_v23  ;;  %v658_v41 = vadd.f32 %v5124_v23, %v5122_v22  ;;  %v685_v45 = vadd.f32 %v670_v31, %v669_v30 }
 0x12b   : > { %v554_v24 = vpop.f32.mrb[4].mxu0  ;;  %v694_v48 = vadd.f32 %v678_v36, %v677_v35 }
 0x12c   : > { %v5126_v25 = vadd.f32 %v554_v24, %v367_v17  ;;  %v556_v27 = vpop.f32.mrb[5].mxu0 }
 0x12d   : > { %v558_v29 = vpop.f32.mrb[6].mxu0  ;;  %v5147_v39 = vadd.f32 %v556_v27, %v371_v26 }
 0x12e   : > { %v5135_v32 = vadd.f32 %v558_v29, %v367_v17  ;;  %v560_v33 = vpop.f32.mrb[7].mxu0  ;;  %v671_v38 = vmul.f32 %v5126_v25, %v5126_v25  ;;  %v650_v46 = vadd.f32 %v649_v37, %v5126_v25 }
 0x12f   : > { %v5154_v43 = vadd.f32 %v560_v33, %v371_v26  ;;  %v672_v52 = vmul.f32 %v5147_v39, %v5147_v39 }
 0x130   : > { %v679_v42 = vmul.f32 %v5135_v32, %v5135_v32  ;;  %v659_v49 = vadd.f32 %v658_v41, %v5135_v32  ;;  %v686_v51 = vadd.f32 %v685_v45, %v671_v38  ;;  %v651_v60 = vadd.f32 %v650_v46, %v5147_v39 }
 0x131   : > { %v680_v57 = vmul.f32 %v5154_v43, %v5154_v43 }
 0x132   : > { %v695_v56 = vadd.f32 %v694_v48, %v679_v42  ;;  %v660_v1 = vadd.f32 %v659_v49, %v5154_v43  ;;  %v687_v8 = vadd.f32 %v686_v51, %v672_v52 }
 0x133   : > { %v597_v50 = vpop.f32.mrb[8].mxu0 }
 0x134   : > { %v5166_v53 = vadd.f32 %v597_v50, %v375_v40  ;;  %v599_v54 = vpop.f32.mrb[9].mxu0  ;;  %v696_v12 = vadd.f32 %v695_v56, %v680_v57  ;;  %v4367_v56 = vld [vmem:[#allocation2 + $0x300] ss:$16 sps:$4 sm:$0xff]  }
 0x135   : > { %v601_v58 = vpop.f32.mrb[10].mxu0  ;;  %v5177_v62 = vadd.f32 %v599_v54, %v379_v47  ;;  %v4365_v54 = vld [vmem:[#allocation2 + $0x104] ss:$16 sps:$4 sm:$0xff]   ;;  %v4370_v57 = vld [vmem:[#allocation2 + $0x100] ss:$16 sps:$4 sm:$0xff]   ;;  %2579 = vmatpush1.bf16.msra.mxu0 %v4367_v56  ;;  %v5230_v56 = vsub.s32 2, %v5084_v3 }
 0x136   : > { %v673_v61 = vmul.f32 %v5166_v53, %v5166_v53  ;;  %v5179_v63 = vadd.f32 %v601_v58, %v375_v40  ;;  %v603_v0 = vpop.f32.mrb[11].mxu0  ;;  %v652_v9 = vadd.f32 %v651_v60, %v5166_v53  ;;  %2535 = vmatprep.subr.bf16.mxu1 %v4365_v54  ;;  %v4371_v58 = vld [vmem:[#allocation2 + $0x124] ss:$16 sps:$4 sm:$0xff]   ;;  %v4373_v60 = vld [vmem:[#allocation2 + $0x320] ss:$16 sps:$4 sm:$0xff]   ;;  %2580 = vmatprep.subr.bf16.mxu0 %v4375_v59  ;;  %v5224_v54 = vsub.s32 5, %v5084_v3 }
 0x137   : > { %v5182_v2 = vadd.f32 %v603_v0, %v379_v47  ;;  %v674_v15 = vmul.f32 %v5177_v62, %v5177_v62  ;;  %2536 = vmatpush1.bf16.msra.mxu1 %v4370_v57  ;;  %v4377_v0 = vld [vmem:[#allocation2 + $0x144] ss:$16 sps:$4 sm:$0xff]  }
 0x138   : > { %v681_v10 = vmul.f32 %v5179_v63, %v5179_v63  ;;  %v661_v13 = vadd.f32 %v660_v1, %v5179_v63  ;;  %v688_v16 = vadd.f32 %v687_v8, %v673_v61  ;;  %v653_v28 = vadd.f32 %v652_v9, %v5177_v62  ;;  %v4376_v61 = vld [vmem:[#allocation2 + $0x120] ss:$16 sps:$4 sm:$0xff]   ;;  %2537 = vmatprep.subr.bf16.mxu1 %v4371_v58  ;;  %v4381_v1 = vld [vmem:[#allocation2 + $0x344] ss:$16 sps:$4 sm:$0xff]  }
 0x139   : > { %v682_v18 = vmul.f32 %v5182_v2, %v5182_v2  ;;  %2581 = vmatpush1.bf16.msra.mxu0 %v4373_v60  ;;  %v4379_v8 = vld [vmem:[#allocation2 + $0x340] ss:$16 sps:$4 sm:$0xff]  }
 0x13a   : > { %v697_v17 = vadd.f32 %v696_v12, %v681_v10  ;;  %v662_v29 = vadd.f32 %v661_v13, %v5182_v2  ;;  %v689_v37 = vadd.f32 %v688_v16, %v674_v15  ;;  %v4382_v9 = vld [vmem:[#allocation2 + $0x140] ss:$16 sps:$4 sm:$0xff]   ;;  %2582 = vmatprep.subr.bf16.mxu0 %v4381_v1  ;;  %v4383_v10 = vld [vmem:[#allocation2 + $0x164] ss:$16 sps:$4 sm:$0xff]  }
 0x13b   : > { %v640_v24 = vpop.f32.mrb[12].mxu0  ;;  %2538 = vmatpush1.bf16.msra.mxu1 %v4376_v61  ;;  %v4385_v12 = vld [vmem:[#allocation2 + $0x360] ss:$16 sps:$4 sm:$0xff]   ;;  %v4393_v15 = vld [vmem:[#allocation2 + $0x384] ss:$16 sps:$4 sm:$0xff]  }
 0x13c   : > { %v5194_v26 = vadd.f32 %v640_v24, %v383_v11  ;;  %v642_v27 = vpop.f32.mrb[13].mxu0  ;;  %v698_v41 = vadd.f32 %v697_v17, %v682_v18  ;;  %2539 = vmatprep.subr.bf16.mxu1 %v4377_v0  ;;  %v4388_v13 = vld [vmem:[#allocation2 + $0x160] ss:$16 sps:$4 sm:$0xff]   ;;  %v4395_v18 = vld [vmem:[#allocation2 + $0x1a4] ss:$16 sps:$4 sm:$0xff]  }
 0x13d   : > { %v5198_v30 = vadd.f32 %v642_v27, %v387_v14  ;;  %v644_v31 = vpop.f32.mrb[14].mxu0  ;;  %2583 = vmatpush1.bf16.msra.mxu0 %v4379_v8  ;;  %v4391_v16 = vld [vmem:[#allocation2 + $0x380] ss:$16 sps:$4 sm:$0xff]   ;;  %v4399_v24 = vld [vmem:[#allocation2 + $0x3a4] ss:$16 sps:$4 sm:$0xff]  }
 0x13e   : > { %v5200_v33 = vadd.f32 %v644_v31, %v383_v11  ;;  %v646_v34 = vpop.f32.mrb[15].mxu0  ;;  %v654_v35 = vadd.f32 %v653_v28, %v5194_v26  ;;  %v675_v36 = vmul.f32 %v5194_v26, %v5194_v26  ;;  %v4387_v11 = vld [vmem:[#allocation2 + $0x364] ss:$16 sps:$4 sm:$0xff]   ;;  %v4394_v17 = vld [vmem:[#allocation2 + $0x180] ss:$16 sps:$4 sm:$0xff]  }
 0x13f   : > { %v5205_v38 = vadd.f32 %v646_v34, %v387_v14  ;;  %v676_v40 = vmul.f32 %v5198_v30, %v5198_v30  ;;  %2540 = vmatpush1.bf16.msra.mxu1 %v4382_v9  ;;  %v4389_v14 = vld [vmem:[#allocation2 + $0x184] ss:$16 sps:$4 sm:$0xff]   ;;  %2584 = vmatprep.subr.bf16.mxu0 %v4387_v11  ;;  %v4397_v27 = vld [vmem:[#allocation2 + $0x3a0] ss:$16 sps:$4 sm:$0xff]   ;;  %v752_v9 = vrot.slane %v5095_v6, %v5224_v54 }
 0x140   : > { %v683_v42 = vmul.f32 %v5200_v33, %v5200_v33  ;;  %v655_v45 = vadd.f32 %v654_v35, %v5198_v30  ;;  %v690_v46 = vadd.f32 %v689_v37, %v675_v36  ;;  %v663_v47 = vadd.f32 %v662_v29, %v5200_v33  ;;  %2541 = vmatprep.subr.bf16.mxu1 %v4383_v10  ;;  %v4400_v28 = vld [vmem:[#allocation2 + $0x1a0] ss:$16 sps:$4 sm:$0xff]   ;;  %v4401_v29 = vld [vmem:[#allocation2 + $0x1c4] ss:$16 sps:$4 sm:$0xff]  }
 0x141   : > { %v684_v49 = vmul.f32 %v5205_v38, %v5205_v38  ;;  %2585 = vmatpush1.bf16.msra.mxu0 %v4385_v12  ;;  %v4405_v31 = vld [vmem:[#allocation2 + $0x3c4] ss:$16 sps:$4 sm:$0xff]   ;;  %v4403_v34 = vld [vmem:[#allocation2 + $0x3c0] ss:$16 sps:$4 sm:$0xff]   ;;  %v760_v10 = vrot.slane %v5100_v7, %v5224_v54  ;;  %v848_v11 = vrot.slane %v5100_v7, %v5227_v55 }
 0x142   : > { %656 = vadd.xlane.f32.xlu0 %v655_v45  ;;  %v691_v48 = vadd.f32 %v690_v46, %v676_v40  ;;  %v699_v50 = vadd.f32 %v698_v41, %v683_v42  ;;  %v664_v51 = vadd.f32 %v663_v47, %v5205_v38  ;;  %2586 = vmatprep.subr.bf16.mxu0 %v4393_v15  ;;  %v4406_v35 = vld [vmem:[#allocation2 + $0x1c0] ss:$16 sps:$4 sm:$0xff]   ;;  %v4407_v36 = vld [vmem:[#allocation2 + $0x1e4] ss:$16 sps:$4 sm:$0xff]   ;;  %v4418_v45 = vld [vmem:[#allocation2 + $0xc] ss:$16 sps:$4 sm:$0xff]  }
 0x143   : > { %2542 = vmatpush1.bf16.msra.mxu1 %v4388_v13  ;;  %v4411_v37 = vld [vmem:[#allocation2 + $0x3e4] ss:$16 sps:$4 sm:$0xff]   ;;  %v4409_v40 = vld [vmem:[#allocation2 + $0x3e0] ss:$16 sps:$4 sm:$0xff]   ;;  %v5217_v47 = vsub.s32 1, %v5084_v3  ;;  %v840_v3 = vrot.slane %v5095_v6, %v5227_v55  ;;  %v844_v15 = vrot.slane %v5100_v7, %v5230_v56 }
 0x144   : > { %692 = vadd.xlane.f32.xlu1 %v691_v48  ;;  %v700_v52 = vadd.f32 %v699_v50, %v684_v49  ;;  %2543 = vmatprep.subr.bf16.mxu1 %v4389_v14  ;;  %v4412_v41 = vld [vmem:[#allocation2 + $0x1e0] ss:$16 sps:$4 sm:$0xff]   ;;  %v4415_v42 = vld [vmem:[#allocation2 + $0x404] ss:$16 sps:$4 sm:$0xff]   ;;  %v836_v14 = vrot.slane %v5095_v6, %v5230_v56 }
 0x145   : > { %2587 = vmatpush1.bf16.msra.mxu0 %v4391_v16  ;;  %v748_v59 = vrot.slane %v5095_v6, %v5217_v47  ;;  %v756_v8 = vrot.slane %v5100_v7, %v5217_v47  ;;  %v768_v16 = vrot.slane %v5116_v19, %v5224_v54  ;;  %v864_v6 = vrot.slane %v5159_v44, %v5227_v55 }
 0x146   : > { %665 = vadd.xlane.f32.xlu0 %v664_v51  ;;  %2588 = vmatprep.subr.bf16.mxu0 %v4399_v24  ;;  %v792_v7 = vrot.slane %v752_v9, %v5217_v47 }
 0x147   : > { %2544 = vmatpush1.bf16.msra.mxu1 %v4394_v17  ;;  %v5249_v13 = vrot.slane %v748_v59, %v5217_v47  ;;  %v856_v17 = vrot.slane %v5116_v19, %v5227_v55 }
 0x148   : > { %701 = vadd.xlane.f32.xlu1 %v700_v52  ;;  %2545 = vmatprep.subr.bf16.mxu1 %v4395_v18  ;;  %v764_v18 = vrot.slane %v5116_v19, %v5217_v47 }
 0x149   : > { %2589 = vmatpush1.bf16.msra.mxu0 %v4397_v27  ;;  %v852_v27 = vrot.slane %v5116_v19, %v5230_v56  ;;  %v880_v19 = vrot.slane %v840_v3, %v5230_v56 }
 0x14a   : > { %2590 = vmatprep.subr.bf16.mxu0 %v4405_v31  ;;  %v772_v31 = vrot.slane %v5159_v44, %v5217_v47 }
 0x14b   : > { %2546 = vmatpush1.bf16.msra.mxu1 %v4400_v28  ;;  %v776_v28 = vrot.slane %v5159_v44, %v5224_v54 }
 0x14c   : > { %2547 = vmatprep.subr.bf16.mxu1 %v4401_v29  ;;  %v5269_v29 = vrot.slane %v756_v8, %v5217_v47 }
 0x14d   : > { %2591 = vmatpush1.bf16.msra.mxu0 %v4403_v34  ;;  %v860_v34 = vrot.slane %v5159_v44, %v5230_v56  ;;  %v5290_v44 = vrot.slane %v852_v27, %v5230_v56 }
 0x14e   : > { %2592 = vmatprep.subr.bf16.mxu0 %v4411_v37  ;;  %v876_v37 = vrot.slane %v836_v14, %v5230_v56 }
 0x14f   : > { %2548 = vmatpush1.bf16.msra.mxu1 %v4406_v35  ;;  %v800_v35 = vrot.slane %v760_v10, %v5217_v47 }
 0x150   : > { %2549 = vmatprep.subr.bf16.mxu1 %v4407_v36  ;;  %v888_v36 = vrot.slane %v848_v11, %v5230_v56 }
 0x151   : > { %2593 = vmatpush1.bf16.msra.mxu0 %v4409_v40  ;;  %v884_v40 = vrot.slane %v844_v15, %v5230_v56 }
 0x152   : > { %2605 = vmatprep.subr.bf16.mxu0 %v4415_v42  ;;  %v5284_v42 = vrot.slane %v856_v17, %v5230_v56 }
 0x153   : > { %2550 = vmatpush1.bf16.msra.mxu1 %v4412_v41  ;;  %v5281_v41 = vrot.slane %v768_v16, %v5217_v47 }
 0x154   : > { %2691 = vmatprep.subr.bf16.mxu1 %v4418_v45  ;;  %v5287_v45 = vrot.slane %v764_v18, %v5217_v47 }
 0x1cf   : > { %v657_v46 = vpop.xlane.xlu0 %656 }
 0x1d0   : > { %v5219_v48 = vmul.f32 0.0009765625, %v657_v46  ;;  %v5293_v46 = vrot.slane %v776_v28, %v5217_v47 }
 0x1d1   : > { %v693_v49 = vpop.xlane.xlu1 %692 }
 0x1d2   : > { %v703_v50 = vmul.f32 0.0009765625, %v693_v49  ;;  %v705_v51 = vmul.f32 %v5219_v48, %v5219_v48  ;;  %v5296_v49 = vrot.slane %v864_v6, %v5230_v56  ;;  %v709_v59 = vsub.f32 %v5118_v20, %v5219_v48 }
 0x1d3   : > { %v666_v52 = vpop.xlane.xlu0 %665  ;;  %v715_v20 = vsub.f32 %v5194_v26, %v5219_v48 }
 0x1d4   : > { %v707_v57 = vsub.f32 %v703_v50, %v705_v51  ;;  %v5232_v58 = vmul.f32 0.0009765625, %v666_v52  ;;  %v710_v50 = vsub.f32 %v5120_v21, %v5219_v48  ;;  %v712_v51 = vsub.f32 %v5147_v39, %v5219_v48 }
 0x1d5   : > { %v702_v60 = vpop.xlane.xlu1 %701  ;;  %v5303_v52 = vrot.slane %v772_v31, %v5217_v47  ;;  %v713_v21 = vsub.f32 %v5166_v53, %v5219_v48 }
 0x1d6   : > { %v725_v61 = vadd.f32 1e-05, %v707_v57  ;;  %v704_v0 = vmul.f32 0.0009765625, %v702_v60  ;;  %v706_v1 = vmul.f32 %v5232_v58, %v5232_v58  ;;  %v5306_v57 = vrot.slane %v860_v34, %v5230_v56 }
 0x1d7   : > { %v711_v60 = vsub.f32 %v5126_v25, %v5219_v48  ;;  %v718_v39 = vsub.f32 %v5124_v23, %v5232_v58  ;;  %v717_v25 = vsub.f32 %v5122_v22, %v5232_v58  ;;  %v722_v53 = vsub.f32 %v5182_v2, %v5232_v58 }
 0x1d8   : > { %4813 = vrsqrt.f32 %v725_v61  ;;  %v708_v12 = vsub.f32 %v704_v0, %v706_v1  ;;  %v714_v61 = vsub.f32 %v5177_v62, %v5219_v48  ;;  %v720_v0 = vsub.f32 %v5154_v43, %v5232_v58 }
 0x1d9   : > { %v716_v1 = vsub.f32 %v5198_v30, %v5219_v48  ;;  %v719_v62 = vsub.f32 %v5135_v32, %v5232_v58  ;;  %v721_v23 = vsub.f32 %v5179_v63, %v5232_v58  ;;  %v724_v63 = vsub.f32 %v5205_v38, %v5232_v58 }
 0x1da   : > { %v726_v24 = vadd.f32 1e-05, %v708_v12  ;;  %v723_v17 = vsub.f32 %v5200_v33, %v5232_v58 }
 0x1dc   : > { %4815 = vrsqrt.f32 %v726_v24 }
 0x1e2   : > { %v4814_v8 = vpop.eup %4813 }
 0x1e3   : > { %v730_v43 = vmul.f32 %v4814_v8, %v710_v50  ;;  %v732_v9 = vmul.f32 %v4814_v8, %v712_v51  ;;  %v729_v3 = vmul.f32 %v4814_v8, %v709_v59  ;;  %v731_v30 = vmul.f32 %v4814_v8, %v711_v60 }
 0x1e4   : > { %v734_v10 = vmul.f32 %v4814_v8, %v714_v61  ;;  %v733_v11 = vmul.f32 %v4814_v8, %v713_v21  ;;  %v736_v26 = vmul.f32 %v4814_v8, %v716_v1  ;;  %v735_v48 = vmul.f32 %v4814_v8, %v715_v20 }
 0x1e5   : > { %v818_v12 = vmul.f32 %v792_v7, %v730_v43  ;;  %v820_v14 = vmul.f32 %v800_v35, %v732_v9  ;;  %v817_v22 = vmul.f32 %v5249_v13, %v729_v3  ;;  %v819_v32 = vmul.f32 %v5269_v29, %v731_v30 }
 0x1e6   : > { %v4816_v15 = vpop.eup %4815  ;;  %v822_v2 = vmul.f32 %v5281_v41, %v734_v10  ;;  %v821_v16 = vmul.f32 %v5287_v45, %v733_v11  ;;  %v824_v50 = vmul.f32 %v5293_v46, %v736_v26  ;;  %v823_v61 = vmul.f32 %v5303_v52, %v735_v48 }
 0x1e7   : > { %v738_v18 = vmul.f32 %v4816_v15, %v718_v39  ;;  %v906_v24 = vadd.f32 %v880_v19, %v818_v12  ;;  %v740_v27 = vmul.f32 %v4816_v15, %v720_v0  ;;  %v908_v28 = vadd.f32 %v888_v36, %v820_v14  ;;  %v4424_v14 = vld [vmem:[#allocation2 + $0x2c] ss:$16 sps:$4 sm:$0xff]  }
 0x1e8   : > { %v737_v6 = vmul.f32 %v4816_v15, %v717_v25  ;;  %v905_v31 = vadd.f32 %v876_v37, %v817_v22  ;;  %v739_v34 = vmul.f32 %v4816_v15, %v719_v62  ;;  %v907_v60 = vadd.f32 %v884_v40, %v819_v32 }
 0x1e9   : > { %v826_v51 = vmul.f32 %v792_v7, %v738_v18  ;;  %v828_v59 = vmul.f32 %v800_v35, %v740_v27  ;;  %v922_v21 = vmax.f32 %v906_v24, 0.0  ;;  %v924_v1 = vmax.f32 %v908_v28, 0.0  ;;  %v4419_v18 = vld [vmem:[#allocation2 + $0x420] ss:$16 sps:$4 sm:$0xff]   ;;  %v4422_v24 = vld [vmem:[#allocation2 + $0x28] ss:$16 sps:$4 sm:$0xff]  }
 0x1ea   : > { %v825_v38 = vmul.f32 %v5249_v13, %v737_v6  ;;  %v827_v33 = vmul.f32 %v5269_v29, %v739_v34  ;;  %v921_v0 = vmax.f32 %v905_v31, 0.0  ;;  %v742_v20 = vmul.f32 %v4816_v15, %v722_v53  ;;  %v4413_v53 = vld [vmem:[#allocation2 + $0x400] ss:$16 sps:$4 sm:$0xff]  }
 0x1eb   : > { %v914_v58 = vadd.f32 %v880_v19, %v826_v51  ;;  %v916_v39 = vadd.f32 %v888_v36, %v828_v59  ;;  %v910_v62 = vadd.f32 %v5284_v42, %v822_v2  ;;  %v741_v43 = vmul.f32 %v4816_v15, %v721_v23  ;;  %v4428_v51 = vld [vmem:[#allocation2 + $0x48] ss:$16 sps:$4 sm:$0xff]  }
 0x1ec   : > { %v913_v8 = vadd.f32 %v876_v37, %v825_v38  ;;  %v915_v25 = vadd.f32 %v884_v40, %v827_v33  ;;  %v923_v9 = vmax.f32 %v907_v60, 0.0  ;;  %v830_v3 = vmul.f32 %v5281_v41, %v742_v20  ;;  %v4416_v37 = vld [vmem:[#allocation2 + $0x8] ss:$16 sps:$4 sm:$0xff]   ;;  %v4421_v41 = vld [vmem:[#allocation2 + $0x424] ss:$16 sps:$4 sm:$0xff]  }
 0x1ed   : > { %v930_v7 = vmax.f32 %v914_v58, 0.0  ;;  %v932_v35 = vmax.f32 %v916_v39, 0.0  ;;  %v829_v13 = vmul.f32 %v5287_v45, %v741_v43  ;;  %v909_v29 = vadd.f32 %v5290_v44, %v821_v16  ;;  %v4433_v60 = vld [vmem:[#allocation2 + $0x464] ss:$16 sps:$4 sm:$0xff]   ;;  %v4434_v38 = vld [vmem:[#allocation2 + $0x68] ss:$16 sps:$4 sm:$0xff]  }
 0x1ee   : > { %v929_v30 = vmax.f32 %v913_v8, 0.0  ;;  %v931_v10 = vmax.f32 %v915_v25, 0.0  ;;  %v918_v40 = vadd.f32 %v5284_v42, %v830_v3  ;;  %v744_v11 = vmul.f32 %v4816_v15, %v724_v63  ;;  %v4442_v33 = vld [vmem:[#allocation2 + $0x8c] ss:$16 sps:$4 sm:$0xff]   ;;  %v4437_v58 = vld [vmem:[#allocation2 + $0x480] ss:$16 sps:$4 sm:$0xff]  }
 0x1ef   : > { %v938_v19 = vpack.c.bf16 %v930_v7, %v922_v21  ;;  %v5348_v36 = vpack.c.bf16 %v932_v35, %v924_v1  ;;  %v926_v48 = vmax.f32 %v910_v62, 0.0  ;;  %v917_v12 = vadd.f32 %v5290_v44, %v829_v13  ;;  %v4431_v1 = vld [vmem:[#allocation2 + $0x460] ss:$16 sps:$4 sm:$0xff]   ;;  %v4440_v39 = vld [vmem:[#allocation2 + $0x88] ss:$16 sps:$4 sm:$0xff]  }
 0x1f0   : > { %v5351_v23 = vpack.c.bf16 %v929_v30, %v921_v0  ;;  %v5353_v26 = vpack.c.bf16 %v931_v10, %v923_v9  ;;  %v934_v45 = vmax.f32 %v918_v40, 0.0  ;;  %v832_v22 = vmul.f32 %v5293_v46, %v744_v11  ;;  %v4445_v0 = vld [vmem:[#allocation2 + $0x4a4] ss:$16 sps:$4 sm:$0xff]   ;;  %v4448_v20 = vld [vmem:[#allocation2 + $0xac] ss:$16 sps:$4 sm:$0xff]  }
 0x1f1   : > { %2551 = vmatprep.mubr.bf16.mxu1 %v938_v19  ;;  %2594 = vmatprep.mubr.bf16.mxu0 %v5348_v36  ;;  %v912_v32 = vadd.f32 %v5296_v49, %v824_v50  ;;  %v743_v2 = vmul.f32 %v4816_v15, %v723_v17  ;;  %v925_v42 = vmax.f32 %v909_v29, 0.0  ;;  %v933_v16 = vmax.f32 %v917_v12, 0.0  ;;  %v4427_v15 = vld [vmem:[#allocation2 + $0x444] ss:$16 sps:$4 sm:$0xff]   ;;  %v4430_v17 = vld [vmem:[#allocation2 + $0x4c] ss:$16 sps:$4 sm:$0xff]  }
 0x1f2   : > { %2552 = vmatmul.mubr.bf16.vlgmr.msra.gmra.mrb[0].mxu1 %v5351_v23  ;;  %2595 = vmatmul.mubr.bf16.vlgmr.msra.gmra.mrb[16].mxu0 %v5353_v26  ;;  %v911_v63 = vadd.f32 %v5306_v57, %v823_v61  ;;  %v5362_v44 = vpack.c.bf16 %v934_v45, %v926_v48  ;;  %v920_v27 = vadd.f32 %v5296_v49, %v832_v22  ;;  %v4425_v50 = vld [vmem:[#allocation2 + $0x440] ss:$16 sps:$4 sm:$0xff]   ;;  %v4436_v61 = vld [vmem:[#allocation2 + $0x6c] ss:$16 sps:$4 sm:$0xff]   ;;  %v4446_v25 = vld [vmem:[#allocation2 + $0xa8] ss:$16 sps:$4 sm:$0xff]  }
 0x1f3   : > { %2606 = vmatpush1.bf16.msra.mxu0 %v4413_v53  ;;  %2692 = vmatpush1.bf16.msra.mxu1 %v4416_v37  ;;  %v831_v46 = vmul.f32 %v5303_v52, %v743_v2  ;;  %v5366_v28 = vpack.c.bf16 %v933_v16, %v925_v42  ;;  %v928_v6 = vmax.f32 %v912_v32, 0.0  ;;  %v4443_v8 = vld [vmem:[#allocation2 + $0x4a0] ss:$16 sps:$4 sm:$0xff]   ;;  %v4451_v62 = vld [vmem:[#allocation2 + $0x4c4] ss:$16 sps:$4 sm:$0xff]  }
 0x1f4   : > { %2723 = vmatprep.mubr.bf16.mxu1 %v938_v19  ;;  %2607 = vmatprep.subr.bf16.mxu0 %v4421_v41  ;;  %v936_v31 = vmax.f32 %v920_v27, 0.0  ;;  %v927_v52 = vmax.f32 %v911_v63, 0.0  ;;  %v4454_v43 = vld [vmem:[#allocation2 + $0xcc] ss:$16 sps:$4 sm:$0xff]   ;;  %v4449_v7 = vld [vmem:[#allocation2 + $0x4c0] ss:$16 sps:$4 sm:$0xff]  }
 0x1f5   : > { %2637 = vmatprep.mubr.bf16.mxu0 %v5362_v44  ;;  %2693 = vmatprep.subr.bf16.mxu1 %v4424_v14  ;;  %v919_v34 = vadd.f32 %v5306_v57, %v831_v46  ;;  %v4439_v57 = vld [vmem:[#allocation2 + $0x484] ss:$16 sps:$4 sm:$0xff]   ;;  %v4452_v35 = vld [vmem:[#allocation2 + $0xc8] ss:$16 sps:$4 sm:$0xff]   ;;  %v4460_v3 = vld [vmem:[#allocation2 + $0xec] ss:$16 sps:$4 sm:$0xff]  }
 0x1f6   : > { %v5370_v49 = vpack.c.bf16 %v936_v31, %v928_v6  ;;  %v4457_v9 = vld [vmem:[#allocation2 + $0x4e4] ss:$16 sps:$4 sm:$0xff]   ;;  %v4455_v30 = vld [vmem:[#allocation2 + $0x4e0] ss:$16 sps:$4 sm:$0xff]   ;;  %v4458_v10 = vld [vmem:[#allocation2 + $0xe8] ss:$16 sps:$4 sm:$0xff]  }
 0x1f7   : > { %2608 = vmatpush1.bf16.msra.mxu0 %v4419_v18  ;;  %2694 = vmatpush1.bf16.msra.mxu1 %v4422_v24  ;;  %v935_v59 = vmax.f32 %v919_v34, 0.0  ;;  %v4463_v13 = vld [vmem:[#allocation2 + $0x504] ss:$16 sps:$4 sm:$0xff]   ;;  %v4466_v29 = vld [vmem:[#allocation2 + $0x10c] ss:$16 sps:$4 sm:$0xff]  }
 0x1f8   : > { %2609 = vmatprep.subr.bf16.mxu0 %v4427_v15  ;;  %2695 = vmatprep.subr.bf16.mxu1 %v4430_v17  ;;  %v4461_v19 = vld [vmem:[#allocation2 + $0x500] ss:$16 sps:$4 sm:$0xff]   ;;  %v4464_v53 = vld [vmem:[#allocation2 + $0x108] ss:$16 sps:$4 sm:$0xff]   ;;  %v4469_v37 = vld [vmem:[#allocation2 + $0x524] ss:$16 sps:$4 sm:$0xff]  }
 0x1f9   : > { %v5372_v21 = vpack.c.bf16 %v935_v59, %v927_v52  ;;  %v4472_v40 = vld [vmem:[#allocation2 + $0x12c] ss:$16 sps:$4 sm:$0xff]   ;;  %v4467_v11 = vld [vmem:[#allocation2 + $0x520] ss:$16 sps:$4 sm:$0xff]   ;;  %v4470_v48 = vld [vmem:[#allocation2 + $0x128] ss:$16 sps:$4 sm:$0xff]  }
 0x1fa   : > { %v4475_v41 = vld [vmem:[#allocation2 + $0x544] ss:$16 sps:$4 sm:$0xff]   ;;  %v4478_v12 = vld [vmem:[#allocation2 + $0x14c] ss:$16 sps:$4 sm:$0xff]   ;;  %v4473_v45 = vld [vmem:[#allocation2 + $0x540] ss:$16 sps:$4 sm:$0xff]  }
 0x1fb   : > { %2610 = vmatpush1.bf16.msra.mxu0 %v4425_v50  ;;  %2696 = vmatpush1.bf16.msra.mxu1 %v4428_v51  ;;  %v4476_v14 = vld [vmem:[#allocation2 + $0x148] ss:$16 sps:$4 sm:$0xff]   ;;  %v4481_v22 = vld [vmem:[#allocation2 + $0x564] ss:$16 sps:$4 sm:$0xff]   ;;  %v4484_v32 = vld [vmem:[#allocation2 + $0x16c] ss:$16 sps:$4 sm:$0xff]  }
 0x1fc   : > { %2611 = vmatprep.subr.bf16.mxu0 %v4433_v60  ;;  %2697 = vmatprep.subr.bf16.mxu1 %v4436_v61  ;;  %v4479_v2 = vld [vmem:[#allocation2 + $0x560] ss:$16 sps:$4 sm:$0xff]   ;;  %v4482_v42 = vld [vmem:[#allocation2 + $0x168] ss:$16 sps:$4 sm:$0xff]   ;;  %v4487_v16 = vld [vmem:[#allocation2 + $0x584] ss:$16 sps:$4 sm:$0xff]  }
 0x1fd   : > { %v4490_v63 = vld [vmem:[#allocation2 + $0x18c] ss:$16 sps:$4 sm:$0xff]   ;;  %v4485_v18 = vld [vmem:[#allocation2 + $0x580] ss:$16 sps:$4 sm:$0xff]   ;;  %v4488_v24 = vld [vmem:[#allocation2 + $0x188] ss:$16 sps:$4 sm:$0xff]  }
 0x1fe   : > { %v4493_v27 = vld [vmem:[#allocation2 + $0x5a4] ss:$16 sps:$4 sm:$0xff]   ;;  %v4496_v46 = vld [vmem:[#allocation2 + $0x1ac] ss:$16 sps:$4 sm:$0xff]   ;;  %v4491_v15 = vld [vmem:[#allocation2 + $0x5a0] ss:$16 sps:$4 sm:$0xff]  }
 0x1ff   : > { %2612 = vmatpush1.bf16.msra.mxu0 %v4431_v1  ;;  %2698 = vmatpush1.bf16.msra.mxu1 %v4434_v38  ;;  %v4494_v17 = vld [vmem:[#allocation2 + $0x1a8] ss:$16 sps:$4 sm:$0xff]   ;;  %v4499_v6 = vld [vmem:[#allocation2 + $0x5c4] ss:$16 sps:$4 sm:$0xff]   ;;  %v4502_v31 = vld [vmem:[#allocation2 + $0x1cc] ss:$16 sps:$4 sm:$0xff]  }
 0x200   : > { %2613 = vmatprep.subr.bf16.mxu0 %v4439_v57  ;;  %2699 = vmatprep.subr.bf16.mxu1 %v4442_v33  ;;  %v4497_v34 = vld [vmem:[#allocation2 + $0x5c0] ss:$16 sps:$4 sm:$0xff]   ;;  %v4500_v50 = vld [vmem:[#allocation2 + $0x1c8] ss:$16 sps:$4 sm:$0xff]   ;;  %v4505_v51 = vld [vmem:[#allocation2 + $0x5e4] ss:$16 sps:$4 sm:$0xff]  }
 0x201   : > { %v4508_v52 = vld [vmem:[#allocation2 + $0x1ec] ss:$16 sps:$4 sm:$0xff]   ;;  %v4503_v59 = vld [vmem:[#allocation2 + $0x5e0] ss:$16 sps:$4 sm:$0xff]   ;;  %v4506_v60 = vld [vmem:[#allocation2 + $0x1e8] ss:$16 sps:$4 sm:$0xff]  }
 0x202   : > { %v4511_v61 = vld [vmem:[#allocation2 + $0x604] ss:$16 sps:$4 sm:$0xff]   ;;  %v4514_v1 = vld [vmem:[#allocation2 + $0x20c] ss:$16 sps:$4 sm:$0xff]   ;;  %v4509_v38 = vld [vmem:[#allocation2 + $0x600] ss:$16 sps:$4 sm:$0xff]  }
 0x203   : > { %2614 = vmatpush1.bf16.msra.mxu0 %v4437_v58  ;;  %2700 = vmatpush1.bf16.msra.mxu1 %v4440_v39  ;;  %v4512_v57 = vld [vmem:[#allocation2 + $0x208] ss:$16 sps:$4 sm:$0xff]   ;;  %v4517_v33 = vld [vmem:[#allocation2 + $0x624] ss:$16 sps:$4 sm:$0xff]   ;;  %v4520_v58 = vld [vmem:[#allocation2 + $0x22c] ss:$16 sps:$4 sm:$0xff]  }
 0x204   : > { %2615 = vmatprep.subr.bf16.mxu0 %v4445_v0  ;;  %2701 = vmatprep.subr.bf16.mxu1 %v4448_v20  ;;  %v4515_v39 = vld [vmem:[#allocation2 + $0x620] ss:$16 sps:$4 sm:$0xff]   ;;  %v4518_v0 = vld [vmem:[#allocation2 + $0x228] ss:$16 sps:$4 sm:$0xff]   ;;  %v4523_v20 = vld [vmem:[#allocation2 + $0x644] ss:$16 sps:$4 sm:$0xff]  }
 0x207   : > { %2616 = vmatpush1.bf16.msra.mxu0 %v4443_v8  ;;  %2702 = vmatpush1.bf16.msra.mxu1 %v4446_v25  ;;  %v4526_v8 = vld [vmem:[#allocation2 + $0x24c] ss:$16 sps:$4 sm:$0xff]   ;;  %v4521_v25 = vld [vmem:[#allocation2 + $0x640] ss:$16 sps:$4 sm:$0xff]  }
 0x208   : > { %2617 = vmatprep.subr.bf16.mxu0 %v4451_v62  ;;  %2703 = vmatprep.subr.bf16.mxu1 %v4454_v43  ;;  %v4524_v62 = vld [vmem:[#allocation2 + $0x248] ss:$16 sps:$4 sm:$0xff]   ;;  %v4529_v43 = vld [vmem:[#allocation2 + $0x664] ss:$16 sps:$4 sm:$0xff]  }
 0x20b   : > { %2618 = vmatpush1.bf16.msra.mxu0 %v4449_v7  ;;  %2704 = vmatpush1.bf16.msra.mxu1 %v4452_v35  ;;  %v4527_v7 = vld [vmem:[#allocation2 + $0x660] ss:$16 sps:$4 sm:$0xff]   ;;  %v4530_v35 = vld [vmem:[#allocation2 + $0x268] ss:$16 sps:$4 sm:$0xff]  }
 0x20c   : > { %2619 = vmatprep.subr.bf16.mxu0 %v4457_v9  ;;  %2705 = vmatprep.subr.bf16.mxu1 %v4460_v3  ;;  %v4535_v9 = vld [vmem:[#allocation2 + $0x684] ss:$16 sps:$4 sm:$0xff]   ;;  %v4533_v3 = vld [vmem:[#allocation2 + $0x680] ss:$16 sps:$4 sm:$0xff]  }
 0x20f   : > { %2620 = vmatpush1.bf16.msra.mxu0 %v4455_v30  ;;  %2706 = vmatpush1.bf16.msra.mxu1 %v4458_v10  ;;  %v4536_v30 = vld [vmem:[#allocation2 + $0x288] ss:$16 sps:$4 sm:$0xff]   ;;  %v4541_v10 = vld [vmem:[#allocation2 + $0x6a4] ss:$16 sps:$4 sm:$0xff]  }
 0x210   : > { %2621 = vmatprep.subr.bf16.mxu0 %v4463_v13  ;;  %2707 = vmatprep.subr.bf16.mxu1 %v4466_v29  ;;  %v4544_v13 = vld [vmem:[#allocation2 + $0x2ac] ss:$16 sps:$4 sm:$0xff]   ;;  %v4539_v29 = vld [vmem:[#allocation2 + $0x6a0] ss:$16 sps:$4 sm:$0xff]  }
 0x213   : > { %2622 = vmatpush1.bf16.msra.mxu0 %v4461_v19  ;;  %2708 = vmatpush1.bf16.msra.mxu1 %v4464_v53  ;;  %v4542_v19 = vld [vmem:[#allocation2 + $0x2a8] ss:$16 sps:$4 sm:$0xff]   ;;  %v4547_v53 = vld [vmem:[#allocation2 + $0x6c4] ss:$16 sps:$4 sm:$0xff]  }
 0x214   : > { %2623 = vmatprep.subr.bf16.mxu0 %v4469_v37  ;;  %2709 = vmatprep.subr.bf16.mxu1 %v4472_v40  ;;  %v4550_v37 = vld [vmem:[#allocation2 + $0x2cc] ss:$16 sps:$4 sm:$0xff]   ;;  %v4545_v40 = vld [vmem:[#allocation2 + $0x6c0] ss:$16 sps:$4 sm:$0xff]  }
 0x217   : > { %2624 = vmatpush1.bf16.msra.mxu0 %v4467_v11  ;;  %2710 = vmatpush1.bf16.msra.mxu1 %v4470_v48  ;;  %v4548_v11 = vld [vmem:[#allocation2 + $0x2c8] ss:$16 sps:$4 sm:$0xff]   ;;  %v4553_v48 = vld [vmem:[#allocation2 + $0x6e4] ss:$16 sps:$4 sm:$0xff]  }
 0x218   : > { %2625 = vmatprep.subr.bf16.mxu0 %v4475_v41  ;;  %2711 = vmatprep.subr.bf16.mxu1 %v4478_v12  ;;  %v4556_v41 = vld [vmem:[#allocation2 + $0x2ec] ss:$16 sps:$4 sm:$0xff]   ;;  %v4551_v12 = vld [vmem:[#allocation2 + $0x6e0] ss:$16 sps:$4 sm:$0xff]  }
 0x21b   : > { %2626 = vmatpush1.bf16.msra.mxu0 %v4473_v45  ;;  %2712 = vmatpush1.bf16.msra.mxu1 %v4476_v14  ;;  %v4554_v45 = vld [vmem:[#allocation2 + $0x2e8] ss:$16 sps:$4 sm:$0xff]   ;;  %v4559_v14 = vld [vmem:[#allocation2 + $0x704] ss:$16 sps:$4 sm:$0xff]  }
 0x21c   : > { %2627 = vmatprep.subr.bf16.mxu0 %v4481_v22  ;;  %2713 = vmatprep.subr.bf16.mxu1 %v4484_v32  ;;  %v4562_v22 = vld [vmem:[#allocation2 + $0x30c] ss:$16 sps:$4 sm:$0xff]   ;;  %v4557_v32 = vld [vmem:[#allocation2 + $0x700] ss:$16 sps:$4 sm:$0xff]  }
 0x21f   : > { %2628 = vmatpush1.bf16.msra.mxu0 %v4479_v2  ;;  %2714 = vmatpush1.bf16.msra.mxu1 %v4482_v42  ;;  %v4560_v2 = vld [vmem:[#allocation2 + $0x308] ss:$16 sps:$4 sm:$0xff]   ;;  %v4565_v42 = vld [vmem:[#allocation2 + $0x724] ss:$16 sps:$4 sm:$0xff]  }
 0x220   : > { %2629 = vmatprep.subr.bf16.mxu0 %v4487_v16  ;;  %2715 = vmatprep.subr.bf16.mxu1 %v4490_v63  ;;  %v4568_v16 = vld [vmem:[#allocation2 + $0x32c] ss:$16 sps:$4 sm:$0xff]   ;;  %v4563_v63 = vld [vmem:[#allocation2 + $0x720] ss:$16 sps:$4 sm:$0xff]  }
 0x223   : > { %2630 = vmatpush1.bf16.msra.mxu0 %v4485_v18  ;;  %2716 = vmatpush1.bf16.msra.mxu1 %v4488_v24  ;;  %v4566_v18 = vld [vmem:[#allocation2 + $0x328] ss:$16 sps:$4 sm:$0xff]   ;;  %v4571_v24 = vld [vmem:[#allocation2 + $0x744] ss:$16 sps:$4 sm:$0xff]  }
 0x224   : > { %2631 = vmatprep.subr.bf16.mxu0 %v4493_v27  ;;  %2717 = vmatprep.subr.bf16.mxu1 %v4496_v46  ;;  %v4574_v27 = vld [vmem:[#allocation2 + $0x34c] ss:$16 sps:$4 sm:$0xff]   ;;  %v4569_v46 = vld [vmem:[#allocation2 + $0x740] ss:$16 sps:$4 sm:$0xff]  }
 0x227   : > { %2632 = vmatpush1.bf16.msra.mxu0 %v4491_v15  ;;  %2718 = vmatpush1.bf16.msra.mxu1 %v4494_v17  ;;  %v4572_v15 = vld [vmem:[#allocation2 + $0x348] ss:$16 sps:$4 sm:$0xff]   ;;  %v4577_v17 = vld [vmem:[#allocation2 + $0x764] ss:$16 sps:$4 sm:$0xff]  }
 0x228   : > { %2633 = vmatprep.subr.bf16.mxu0 %v4499_v6  ;;  %2719 = vmatprep.subr.bf16.mxu1 %v4502_v31  ;;  %v4580_v6 = vld [vmem:[#allocation2 + $0x36c] ss:$16 sps:$4 sm:$0xff]   ;;  %v4575_v31 = vld [vmem:[#allocation2 + $0x760] ss:$16 sps:$4 sm:$0xff]  }
 0x22b   : > { %2634 = vmatpush1.bf16.msra.mxu0 %v4497_v34  ;;  %2720 = vmatpush1.bf16.msra.mxu1 %v4500_v50  ;;  %v4578_v34 = vld [vmem:[#allocation2 + $0x368] ss:$16 sps:$4 sm:$0xff]   ;;  %v4583_v50 = vld [vmem:[#allocation2 + $0x784] ss:$16 sps:$4 sm:$0xff]  }
 0x22c   : > { %2635 = vmatprep.subr.bf16.mxu0 %v4505_v51  ;;  %2721 = vmatprep.subr.bf16.mxu1 %v4508_v52  ;;  %v4586_v51 = vld [vmem:[#allocation2 + $0x38c] ss:$16 sps:$4 sm:$0xff]   ;;  %v4581_v52 = vld [vmem:[#allocation2 + $0x780] ss:$16 sps:$4 sm:$0xff]  }
 0x22f   : > { %2636 = vmatpush1.bf16.msra.mxu0 %v4503_v59  ;;  %2722 = vmatpush1.bf16.msra.mxu1 %v4506_v60  ;;  %v4584_v59 = vld [vmem:[#allocation2 + $0x388] ss:$16 sps:$4 sm:$0xff]   ;;  %v4589_v60 = vld [vmem:[#allocation2 + $0x7a4] ss:$16 sps:$4 sm:$0xff]  }
 0x230   : > { %2648 = vmatprep.subr.bf16.mxu0 %v4511_v61  ;;  %2734 = vmatprep.subr.bf16.mxu1 %v4514_v1  ;;  %v4592_v61 = vld [vmem:[#allocation2 + $0x3ac] ss:$16 sps:$4 sm:$0xff]   ;;  %v4587_v1 = vld [vmem:[#allocation2 + $0x7a0] ss:$16 sps:$4 sm:$0xff]  }
 0x232   : > { %2638 = vmatmul.mubr.bf16.vlgmr.msra.gmra.mrb[16].mxu0 %v5366_v28  ;;  %2724 = vmatmul.mubr.bf16.vlgmr.msra.gmra.mrb[4].mxu1 %v5351_v23  ;;  %v4532_v23 = vld [vmem:[#allocation2 + $0x26c] ss:$16 sps:$4 sm:$0xff]  }
 0x233   : > { %2649 = vmatpush1.bf16.msra.mxu0 %v4509_v38  ;;  %2680 = vmatprep.mubr.bf16.mxu0 %v5370_v49  ;;  %v4590_v38 = vld [vmem:[#allocation2 + $0x3a8] ss:$16 sps:$4 sm:$0xff]  }
 0x234   : > { %2735 = vmatpush1.bf16.msra.mxu1 %v4512_v57  ;;  %2766 = vmatprep.mubr.bf16.mxu1 %v5348_v36  ;;  %v4538_v36 = vld [vmem:[#allocation2 + $0x28c] ss:$16 sps:$4 sm:$0xff]   ;;  %v4595_v57 = vld [vmem:[#allocation2 + $0x7c4] ss:$16 sps:$4 sm:$0xff]  }
 0x235   : > { %2650 = vmatprep.subr.bf16.mxu0 %v4517_v33  ;;  %2736 = vmatprep.subr.bf16.mxu1 %v4520_v58  ;;  %v4598_v33 = vld [vmem:[#allocation2 + $0x3cc] ss:$16 sps:$4 sm:$0xff]   ;;  %v4593_v58 = vld [vmem:[#allocation2 + $0x7c0] ss:$16 sps:$4 sm:$0xff]  }
 0x237   : > { %2651 = vmatpush1.bf16.msra.mxu0 %v4515_v39  ;;  %v4596_v39 = vld [vmem:[#allocation2 + $0x3c8] ss:$16 sps:$4 sm:$0xff]  }
 0x238   : > { %2737 = vmatpush1.bf16.msra.mxu1 %v4518_v0  ;;  %2652 = vmatprep.subr.bf16.mxu0 %v4523_v20  ;;  %v4601_v0 = vld [vmem:[#allocation2 + $0x7e4] ss:$16 sps:$4 sm:$0xff]   ;;  %v4604_v20 = vld [vmem:[#allocation2 + $0x3ec] ss:$16 sps:$4 sm:$0xff]  }
 0x239   : > { %2738 = vmatprep.subr.bf16.mxu1 %v4526_v8  ;;  %v4599_v8 = vld [vmem:[#allocation2 + $0x7e0] ss:$16 sps:$4 sm:$0xff]  }
 0x23b   : > { %2653 = vmatpush1.bf16.msra.mxu0 %v4521_v25  ;;  %v4602_v25 = vld [vmem:[#allocation2 + $0x3e8] ss:$16 sps:$4 sm:$0xff]  }
 0x23c   : > { %2739 = vmatpush1.bf16.msra.mxu1 %v4524_v62  ;;  %2654 = vmatprep.subr.bf16.mxu0 %v4529_v43  ;;  %v4607_v62 = vld [vmem:[#allocation2 + $0x40c] ss:$16 sps:$4 sm:$0xff]   ;;  %v4605_v43 = vld [vmem:[#allocation2 + $0x408] ss:$16 sps:$4 sm:$0xff]  }
 0x23d   : > { %2740 = vmatprep.subr.bf16.mxu1 %v4532_v23  ;;  %v4610_v23 = vld [vmem:[#allocation2 + $0x42c] ss:$16 sps:$4 sm:$0xff]  }
 0x23f   : > { %2655 = vmatpush1.bf16.msra.mxu0 %v4527_v7  ;;  %v4608_v7 = vld [vmem:[#allocation2 + $0x428] ss:$16 sps:$4 sm:$0xff]  }
 0x240   : > { %2741 = vmatpush1.bf16.msra.mxu1 %v4530_v35  ;;  %2656 = vmatprep.subr.bf16.mxu0 %v4535_v9  ;;  %v4613_v35 = vld [vmem:[#allocation2 + $0x44c] ss:$16 sps:$4 sm:$0xff]   ;;  %v4611_v9 = vld [vmem:[#allocation2 + $0x448] ss:$16 sps:$4 sm:$0xff]  }
 0x241   : > { %2742 = vmatprep.subr.bf16.mxu1 %v4538_v36  ;;  %v4616_v36 = vld [vmem:[#allocation2 + $0x46c] ss:$16 sps:$4 sm:$0xff]  }
 0x243   : > { %2657 = vmatpush1.bf16.msra.mxu0 %v4533_v3  ;;  %v4614_v3 = vld [vmem:[#allocation2 + $0x468] ss:$16 sps:$4 sm:$0xff]  }
 0x244   : > { %2743 = vmatpush1.bf16.msra.mxu1 %v4536_v30  ;;  %2658 = vmatprep.subr.bf16.mxu0 %v4541_v10  ;;  %v4619_v30 = vld [vmem:[#allocation2 + $0x48c] ss:$16 sps:$4 sm:$0xff]   ;;  %v4617_v10 = vld [vmem:[#allocation2 + $0x488] ss:$16 sps:$4 sm:$0xff]  }
 0x245   : > { %2744 = vmatprep.subr.bf16.mxu1 %v4544_v13  ;;  %v4622_v13 = vld [vmem:[#allocation2 + $0x4ac] ss:$16 sps:$4 sm:$0xff]  }
 0x247   : > { %2659 = vmatpush1.bf16.msra.mxu0 %v4539_v29  ;;  %v4625_v29 = vld [vmem:[#allocation2 + $0x4cc] ss:$16 sps:$4 sm:$0xff]  }
 0x248   : > { %2745 = vmatpush1.bf16.msra.mxu1 %v4542_v19  ;;  %2660 = vmatprep.subr.bf16.mxu0 %v4547_v53  ;;  %v4628_v19 = vld [vmem:[#allocation2 + $0x4ec] ss:$16 sps:$4 sm:$0xff]   ;;  %v4626_v53 = vld [vmem:[#allocation2 + $0x4e8] ss:$16 sps:$4 sm:$0xff]  }
 0x249   : > { %2746 = vmatprep.subr.bf16.mxu1 %v4550_v37  ;;  %v4631_v37 = vld [vmem:[#allocation2 + $0x50c] ss:$16 sps:$4 sm:$0xff]  }
 0x24b   : > { %2661 = vmatpush1.bf16.msra.mxu0 %v4545_v40  ;;  %v4629_v40 = vld [vmem:[#allocation2 + $0x508] ss:$16 sps:$4 sm:$0xff]  }
 0x24c   : > { %2747 = vmatpush1.bf16.msra.mxu1 %v4548_v11  ;;  %2662 = vmatprep.subr.bf16.mxu0 %v4553_v48  ;;  %v4634_v11 = vld [vmem:[#allocation2 + $0x52c] ss:$16 sps:$4 sm:$0xff]   ;;  %v4632_v48 = vld [vmem:[#allocation2 + $0x528] ss:$16 sps:$4 sm:$0xff]  }
 0x24d   : > { %2748 = vmatprep.subr.bf16.mxu1 %v4556_v41  ;;  %v4637_v41 = vld [vmem:[#allocation2 + $0x54c] ss:$16 sps:$4 sm:$0xff]  }
 0x24f   : > { %2663 = vmatpush1.bf16.msra.mxu0 %v4551_v12  ;;  %v4635_v12 = vld [vmem:[#allocation2 + $0x548] ss:$16 sps:$4 sm:$0xff]  }
 0x250   : > { %2749 = vmatpush1.bf16.msra.mxu1 %v4554_v45  ;;  %2664 = vmatprep.subr.bf16.mxu0 %v4559_v14  ;;  %v4640_v45 = vld [vmem:[#allocation2 + $0x56c] ss:$16 sps:$4 sm:$0xff]   ;;  %v4638_v14 = vld [vmem:[#allocation2 + $0x568] ss:$16 sps:$4 sm:$0xff]  }
 0x251   : > { %2750 = vmatprep.subr.bf16.mxu1 %v4562_v22  ;;  %v4643_v22 = vld [vmem:[#allocation2 + $0x58c] ss:$16 sps:$4 sm:$0xff]  }
 0x253   : > { %2665 = vmatpush1.bf16.msra.mxu0 %v4557_v32  ;;  %v4641_v32 = vld [vmem:[#allocation2 + $0x588] ss:$16 sps:$4 sm:$0xff]  }
 0x254   : > { %2751 = vmatpush1.bf16.msra.mxu1 %v4560_v2  ;;  %2666 = vmatprep.subr.bf16.mxu0 %v4565_v42  ;;  %v4646_v2 = vld [vmem:[#allocation2 + $0x5ac] ss:$16 sps:$4 sm:$0xff]   ;;  %v4644_v42 = vld [vmem:[#allocation2 + $0x5a8] ss:$16 sps:$4 sm:$0xff]  }
 0x255   : > { %2752 = vmatprep.subr.bf16.mxu1 %v4568_v16  ;;  %v4649_v16 = vld [vmem:[#allocation2 + $0x5cc] ss:$16 sps:$4 sm:$0xff]  }
 0x257   : > { %2667 = vmatpush1.bf16.msra.mxu0 %v4563_v63  ;;  %v4647_v63 = vld [vmem:[#allocation2 + $0x5c8] ss:$16 sps:$4 sm:$0xff]  }
 0x258   : > { %2753 = vmatpush1.bf16.msra.mxu1 %v4566_v18  ;;  %2668 = vmatprep.subr.bf16.mxu0 %v4571_v24  ;;  %v4652_v18 = vld [vmem:[#allocation2 + $0x5ec] ss:$16 sps:$4 sm:$0xff]   ;;  %v4650_v24 = vld [vmem:[#allocation2 + $0x5e8] ss:$16 sps:$4 sm:$0xff]  }
 0x259   : > { %2754 = vmatprep.subr.bf16.mxu1 %v4574_v27  ;;  %v4655_v27 = vld [vmem:[#allocation2 + $0x60c] ss:$16 sps:$4 sm:$0xff]  }
 0x25b   : > { %2669 = vmatpush1.bf16.msra.mxu0 %v4569_v46  ;;  %v4653_v46 = vld [vmem:[#allocation2 + $0x608] ss:$16 sps:$4 sm:$0xff]  }
 0x25c   : > { %2755 = vmatpush1.bf16.msra.mxu1 %v4572_v15  ;;  %2670 = vmatprep.subr.bf16.mxu0 %v4577_v17  ;;  %v4658_v15 = vld [vmem:[#allocation2 + $0x62c] ss:$16 sps:$4 sm:$0xff]   ;;  %v4656_v17 = vld [vmem:[#allocation2 + $0x628] ss:$16 sps:$4 sm:$0xff]  }
 0x25d   : > { %2756 = vmatprep.subr.bf16.mxu1 %v4580_v6  ;;  %v4661_v6 = vld [vmem:[#allocation2 + $0x64c] ss:$16 sps:$4 sm:$0xff]  }
 0x25f   : > { %2671 = vmatpush1.bf16.msra.mxu0 %v4575_v31  ;;  %v4659_v31 = vld [vmem:[#allocation2 + $0x648] ss:$16 sps:$4 sm:$0xff]  }
 0x260   : > { %2757 = vmatpush1.bf16.msra.mxu1 %v4578_v34  ;;  %2672 = vmatprep.subr.bf16.mxu0 %v4583_v50  ;;  %v4664_v34 = vld [vmem:[#allocation2 + $0x66c] ss:$16 sps:$4 sm:$0xff]   ;;  %v4662_v50 = vld [vmem:[#allocation2 + $0x668] ss:$16 sps:$4 sm:$0xff]  }
 0x261   : > { %2758 = vmatprep.subr.bf16.mxu1 %v4586_v51  ;;  %v4667_v51 = vld [vmem:[#allocation2 + $0x68c] ss:$16 sps:$4 sm:$0xff]  }
 0x263   : > { %2673 = vmatpush1.bf16.msra.mxu0 %v4581_v52  ;;  %v4665_v52 = vld [vmem:[#allocation2 + $0x688] ss:$16 sps:$4 sm:$0xff]  }
 0x264   : > { %2759 = vmatpush1.bf16.msra.mxu1 %v4584_v59  ;;  %2674 = vmatprep.subr.bf16.mxu0 %v4589_v60  ;;  %v4670_v59 = vld [vmem:[#allocation2 + $0x6ac] ss:$16 sps:$4 sm:$0xff]  }
 0x265   : > { %2760 = vmatprep.subr.bf16.mxu1 %v4592_v61 }
 0x267   : > { %2675 = vmatpush1.bf16.msra.mxu0 %v4587_v1 }
 0x268   : > { %2761 = vmatpush1.bf16.msra.mxu1 %v4590_v38  ;;  %2676 = vmatprep.subr.bf16.mxu0 %v4595_v57  ;;  %v4671_v57 = vld [vmem:[#allocation2 + $0x6c8] ss:$16 sps:$4 sm:$0xff]  }
 0x269   : > { %2762 = vmatprep.subr.bf16.mxu1 %v4598_v33  ;;  %v4676_v33 = vld [vmem:[#allocation2 + $0x6ec] ss:$16 sps:$4 sm:$0xff]  }
 0x26b   : > { %2677 = vmatpush1.bf16.msra.mxu0 %v4593_v58  ;;  %v4674_v58 = vld [vmem:[#allocation2 + $0x6e8] ss:$16 sps:$4 sm:$0xff]  }
 0x26c   : > { %2763 = vmatpush1.bf16.msra.mxu1 %v4596_v39  ;;  %2678 = vmatprep.subr.bf16.mxu0 %v4601_v0  ;;  %v4679_v39 = vld [vmem:[#allocation2 + $0x70c] ss:$16 sps:$4 sm:$0xff]   ;;  %v4677_v0 = vld [vmem:[#allocation2 + $0x708] ss:$16 sps:$4 sm:$0xff]  }
 0x26d   : > { %2764 = vmatprep.subr.bf16.mxu1 %v4604_v20  ;;  %v4682_v20 = vld [vmem:[#allocation2 + $0x72c] ss:$16 sps:$4 sm:$0xff]  }
 0x26f   : > { %2679 = vmatpush1.bf16.msra.mxu0 %v4599_v8  ;;  %v4680_v8 = vld [vmem:[#allocation2 + $0x728] ss:$16 sps:$4 sm:$0xff]  }
 0x270   : > { %2765 = vmatpush1.bf16.msra.mxu1 %v4602_v25  ;;  %v4685_v25 = vld [vmem:[#allocation2 + $0x74c] ss:$16 sps:$4 sm:$0xff]  }
 0x271   : > { %2777 = vmatprep.subr.bf16.mxu1 %v4607_v62  ;;  %v4683_v62 = vld [vmem:[#allocation2 + $0x748] ss:$16 sps:$4 sm:$0xff]  }
 0x272   : > { %2681 = vmatmul.mubr.bf16.vlgmr.msra.gmra.mrb[16].mxu0 %v5372_v21 }
 0x273   : > { %2767 = vmatmul.mubr.bf16.vlgmr.msra.gmra.mrb[4].mxu1 %v5353_v26  ;;  %v4620_v26 = vld [vmem:[#allocation2 + $0x4a8] ss:$16 sps:$4 sm:$0xff]  }
 0x274   : > { %2778 = vmatpush1.bf16.msra.mxu1 %v4605_v43  ;;  %2809 = vmatprep.mubr.bf16.mxu1 %v5362_v44  ;;  %v4623_v44 = vld [vmem:[#allocation2 + $0x4c8] ss:$16 sps:$4 sm:$0xff]   ;;  %v4688_v43 = vld [vmem:[#allocation2 + $0x76c] ss:$16 sps:$4 sm:$0xff]  }
 0x275   : > { %2779 = vmatprep.subr.bf16.mxu1 %v4610_v23  ;;  %v4686_v23 = vld [vmem:[#allocation2 + $0x768] ss:$16 sps:$4 sm:$0xff]  }
 0x278   : > { %2780 = vmatpush1.bf16.msra.mxu1 %v4608_v7  ;;  %v4691_v7 = vld [vmem:[#allocation2 + $0x78c] ss:$16 sps:$4 sm:$0xff]  }
 0x279   : > { %2781 = vmatprep.subr.bf16.mxu1 %v4613_v35  ;;  %v4689_v35 = vld [vmem:[#allocation2 + $0x788] ss:$16 sps:$4 sm:$0xff]  }
 0x27c   : > { %2782 = vmatpush1.bf16.msra.mxu1 %v4611_v9  ;;  %v4694_v9 = vld [vmem:[#allocation2 + $0x7ac] ss:$16 sps:$4 sm:$0xff]  }
 0x27d   : > { %2783 = vmatprep.subr.bf16.mxu1 %v4616_v36  ;;  %v4692_v36 = vld [vmem:[#allocation2 + $0x7a8] ss:$16 sps:$4 sm:$0xff]  }
 0x280   : > { %2784 = vmatpush1.bf16.msra.mxu1 %v4614_v3  ;;  %v4697_v3 = vld [vmem:[#allocation2 + $0x7cc] ss:$16 sps:$4 sm:$0xff]  }
 0x281   : > { %2785 = vmatprep.subr.bf16.mxu1 %v4619_v30  ;;  %v4695_v30 = vld [vmem:[#allocation2 + $0x7c8] ss:$16 sps:$4 sm:$0xff]  }
 0x284   : > { %2786 = vmatpush1.bf16.msra.mxu1 %v4617_v10  ;;  %v4700_v10 = vld [vmem:[#allocation2 + $0x7ec] ss:$16 sps:$4 sm:$0xff]  }
 0x285   : > { %2787 = vmatprep.subr.bf16.mxu1 %v4622_v13  ;;  %v4698_v13 = vld [vmem:[#allocation2 + $0x7e8] ss:$16 sps:$4 sm:$0xff]  }
 0x288   : > { %2788 = vmatpush1.bf16.msra.mxu1 %v4620_v26  ;;  %v5387_v26 = vld [vmem:[%s5592_s5 + $0x20] sm:$0x77] }
 0x289   : > { %2789 = vmatprep.subr.bf16.mxu1 %v4625_v29  ;;  %v1206_v29 = vrot.slane %v5387_v26, %v5087_v4 }
 0x28c   : > { %2790 = vmatpush1.bf16.msra.mxu1 %v4623_v44  ;;  %v1210_v44 = vrot.slane %v5387_v26, %v5090_v5 }
 0x28d   : > { %2791 = vmatprep.subr.bf16.mxu1 %v4628_v19  ;;  %v1226_v19 = vrot.slane %v1206_v29, %v5087_v4 }
 0x290   : > { %2792 = vmatpush1.bf16.msra.mxu1 %v4626_v53  ;;  %v1230_v53 = vrot.slane %v1210_v44, %v5087_v4 }
 0x291   : > { %2793 = vmatprep.subr.bf16.mxu1 %v4631_v37 }
 0x294   : > { %2794 = vmatpush1.bf16.msra.mxu1 %v4629_v40 }
 0x295   : > { %2795 = vmatprep.subr.bf16.mxu1 %v4634_v11 }
 0x298   : > { %2796 = vmatpush1.bf16.msra.mxu1 %v4632_v48 }
 0x299   : > { %2797 = vmatprep.subr.bf16.mxu1 %v4637_v41 }
 0x29c   : > { %2798 = vmatpush1.bf16.msra.mxu1 %v4635_v12 }
 0x29d   : > { %2799 = vmatprep.subr.bf16.mxu1 %v4640_v45 }
 0x2a0   : > { %2800 = vmatpush1.bf16.msra.mxu1 %v4638_v14 }
 0x2a1   : > { %2801 = vmatprep.subr.bf16.mxu1 %v4643_v22 }
 0x2a4   : > { %2802 = vmatpush1.bf16.msra.mxu1 %v4641_v32 }
 0x2a5   : > { %2803 = vmatprep.subr.bf16.mxu1 %v4646_v2 }
 0x2a8   : > { %2804 = vmatpush1.bf16.msra.mxu1 %v4644_v42  ;;  %v4701_v42 = vld [vmem:[#allocation4] ss:$8 sps:$4 sm:$0xff]  }
 0x2a9   : > { %2805 = vmatprep.subr.bf16.mxu1 %v4649_v16  ;;  %v4703_v16 = vld [vmem:[#allocation4 + $0x4] ss:$8 sps:$4 sm:$0xff]  }
 0x2aa   : > { %3422 = vmatprep.subr.bf16.mxu0 %v4703_v16  ;;  %v4731_v16 = vld [vmem:[#allocation4 + $0xa0] ss:$8 sps:$4 sm:$0xff]  }
 0x2ab   : > { %3423 = vmatpush1.bf16.msra.mxu0 %v4701_v42  ;;  %v4733_v42 = vld [vmem:[#allocation4 + $0xa4] ss:$8 sps:$4 sm:$0xff]  }
 0x2ac   : > { %2806 = vmatpush1.bf16.msra.mxu1 %v4647_v63  ;;  %v4706_v63 = vld [vmem:[#allocation4 + $0x14] ss:$8 sps:$4 sm:$0xff]  }
 0x2ad   : > { %2807 = vmatprep.subr.bf16.mxu1 %v4652_v18  ;;  %v4704_v18 = vld [vmem:[#allocation4 + $0x10] ss:$8 sps:$4 sm:$0xff]   ;;  %3424 = vmatprep.subr.bf16.mxu0 %v4706_v63  ;;  %v4736_v63 = vld [vmem:[#allocation4 + $0xb4] ss:$8 sps:$4 sm:$0xff]  }
 0x2af   : > { %3425 = vmatpush1.bf16.msra.mxu0 %v4704_v18  ;;  %v4734_v18 = vld [vmem:[#allocation4 + $0xb0] ss:$8 sps:$4 sm:$0xff]  }
 0x2b0   : > { %2808 = vmatpush1.bf16.msra.mxu1 %v4650_v24  ;;  %v4709_v24 = vld [vmem:[#allocation4 + $0x24] ss:$8 sps:$4 sm:$0xff]  }
 0x2b1   : > { %2820 = vmatprep.subr.bf16.mxu1 %v4655_v27  ;;  %v4707_v27 = vld [vmem:[#allocation4 + $0x20] ss:$8 sps:$4 sm:$0xff]   ;;  %3426 = vmatprep.subr.bf16.mxu0 %v4709_v24  ;;  %v4739_v24 = vld [vmem:[#allocation4 + $0xc4] ss:$8 sps:$4 sm:$0xff]  }
 0x2b3   : > { %2810 = vmatmul.mubr.bf16.vlgmr.msra.gmra.mrb[4].mxu1 %v5366_v28  ;;  %v4668_v28 = vld [vmem:[#allocation2 + $0x6a8] ss:$16 sps:$4 sm:$0xff]   ;;  %3427 = vmatpush1.bf16.msra.mxu0 %v4707_v27 }
 0x2b4   : > { %2821 = vmatpush1.bf16.msra.mxu1 %v4653_v46  ;;  %2852 = vmatprep.mubr.bf16.mxu1 %v5370_v49  ;;  %v4673_v49 = vld [vmem:[#allocation2 + $0x6cc] ss:$16 sps:$4 sm:$0xff]   ;;  %v4737_v27 = vld [vmem:[#allocation4 + $0xc0] ss:$8 sps:$4 sm:$0xff]  }
 0x2b5   : > { %2822 = vmatprep.subr.bf16.mxu1 %v4658_v15  ;;  %v4712_v46 = vld [vmem:[#allocation4 + $0x34] ss:$8 sps:$4 sm:$0xff]   ;;  %v4710_v15 = vld [vmem:[#allocation4 + $0x30] ss:$8 sps:$4 sm:$0xff]  }
 0x2b6   : > { %3428 = vmatprep.subr.bf16.mxu0 %v4712_v46  ;;  %v4742_v46 = vld [vmem:[#allocation4 + $0xd4] ss:$8 sps:$4 sm:$0xff]  }
 0x2b7   : > { %3429 = vmatpush1.bf16.msra.mxu0 %v4710_v15  ;;  %v4740_v15 = vld [vmem:[#allocation4 + $0xd0] ss:$8 sps:$4 sm:$0xff]  }
 0x2b8   : > { %2823 = vmatpush1.bf16.msra.mxu1 %v4656_v17  ;;  %v4715_v17 = vld [vmem:[#allocation4 + $0x44] ss:$8 sps:$4 sm:$0xff]  }
 0x2b9   : > { %2824 = vmatprep.subr.bf16.mxu1 %v4661_v6  ;;  %v4713_v6 = vld [vmem:[#allocation4 + $0x40] ss:$8 sps:$4 sm:$0xff]   ;;  %3430 = vmatprep.subr.bf16.mxu0 %v4715_v17  ;;  %v4745_v17 = vld [vmem:[#allocation4 + $0xe4] ss:$8 sps:$4 sm:$0xff]  }
 0x2bb   : > { %3431 = vmatpush1.bf16.msra.mxu0 %v4713_v6  ;;  %v4743_v6 = vld [vmem:[#allocation4 + $0xe0] ss:$8 sps:$4 sm:$0xff]  }
 0x2bc   : > { %2825 = vmatpush1.bf16.msra.mxu1 %v4659_v31  ;;  %v4718_v31 = vld [vmem:[#allocation4 + $0x54] ss:$8 sps:$4 sm:$0xff]  }
 0x2bd   : > { %2826 = vmatprep.subr.bf16.mxu1 %v4664_v34  ;;  %v4716_v34 = vld [vmem:[#allocation4 + $0x50] ss:$8 sps:$4 sm:$0xff]   ;;  %3432 = vmatprep.subr.bf16.mxu0 %v4718_v31  ;;  %v4748_v31 = vld [vmem:[#allocation4 + $0xf4] ss:$8 sps:$4 sm:$0xff]  }
 0x2bf   : > { %3433 = vmatpush1.bf16.msra.mxu0 %v4716_v34  ;;  %v4746_v34 = vld [vmem:[#allocation4 + $0xf0] ss:$8 sps:$4 sm:$0xff]  }
 0x2c0   : > { %2827 = vmatpush1.bf16.msra.mxu1 %v4662_v50  ;;  %v4721_v50 = vld [vmem:[#allocation4 + $0x64] ss:$8 sps:$4 sm:$0xff]  }
 0x2c1   : > { %2828 = vmatprep.subr.bf16.mxu1 %v4667_v51  ;;  %v4719_v51 = vld [vmem:[#allocation4 + $0x60] ss:$8 sps:$4 sm:$0xff]   ;;  %3434 = vmatprep.subr.bf16.mxu0 %v4721_v50  ;;  %v4751_v50 = vld [vmem:[#allocation4 + $0x104] ss:$8 sps:$4 sm:$0xff]  }
 0x2c3   : > { %3435 = vmatpush1.bf16.msra.mxu0 %v4719_v51 }
 0x2c4   : > { %2829 = vmatpush1.bf16.msra.mxu1 %v4665_v52  ;;  %v4724_v52 = vld [vmem:[#allocation4 + $0x74] ss:$8 sps:$4 sm:$0xff]  }
 0x2c5   : > { %v2553_v60 = vpop.f32.mrb[0].mxu1  ;;  %2830 = vmatprep.subr.bf16.mxu1 %v4670_v59  ;;  %v4722_v59 = vld [vmem:[#allocation4 + $0x70] ss:$8 sps:$4 sm:$0xff]   ;;  %3436 = vmatprep.subr.bf16.mxu0 %v4724_v52 }
 0x2c6   : > { %v2555_v61 = vpop.f32.mrb[1].mxu1  ;;  %v2554_v37 = vadd.f32 %v2553_v60, %v1226_v19 }
 0x2c7   : > { %v2557_v1 = vpop.f32.mrb[2].mxu1  ;;  %v2556_v40 = vadd.f32 %v2555_v61, %v1230_v53  ;;  %3437 = vmatpush1.bf16.msra.mxu0 %v4722_v59 }
 0x2c8   : > { %2831 = vmatpush1.bf16.msra.mxu1 %v4668_v28  ;;  %v2559_v38 = vpop.f32.mrb[3].mxu1  ;;  %v2558_v48 = vadd.f32 %v2557_v1, %v1226_v19  ;;  %v5406_v28 = vld [vmem:[%s5592_s5 + $0x28] sm:$0x77] }
 0x2c9   : > { %2832 = vmatprep.subr.bf16.mxu1 %v4673_v49  ;;  %v2560_v12 = vadd.f32 %v2559_v38, %v1230_v53  ;;  %v1214_v60 = vrot.slane %v5406_v28, %v5087_v4  ;;  %v1218_v49 = vrot.slane %v5406_v28, %v5090_v5 }
 0x2cb   : > { %v1234_v61 = vrot.slane %v1214_v60, %v5087_v4  ;;  %v1238_v1 = vrot.slane %v1218_v49, %v5087_v4 }
 0x2cc   : > { %2833 = vmatpush1.bf16.msra.mxu1 %v4671_v57 }
 0x2cd   : > { %2834 = vmatprep.subr.bf16.mxu1 %v4676_v33 }
 0x2d0   : > { %2835 = vmatpush1.bf16.msra.mxu1 %v4674_v58 }
 0x2d1   : > { %2836 = vmatprep.subr.bf16.mxu1 %v4679_v39 }
 0x2d4   : > { %2837 = vmatpush1.bf16.msra.mxu1 %v4677_v0 }
 0x2d5   : > { %2838 = vmatprep.subr.bf16.mxu1 %v4682_v20 }
 0x2d8   : > { %2839 = vmatpush1.bf16.msra.mxu1 %v4680_v8 }
 0x2d9   : > { %2840 = vmatprep.subr.bf16.mxu1 %v4685_v25 }
 0x2dc   : > { %2841 = vmatpush1.bf16.msra.mxu1 %v4683_v62 }
 0x2dd   : > { %2842 = vmatprep.subr.bf16.mxu1 %v4688_v43 }
 0x2e0   : > { %2843 = vmatpush1.bf16.msra.mxu1 %v4686_v23 }
 0x2e1   : > { %2844 = vmatprep.subr.bf16.mxu1 %v4691_v7 }
 0x2e4   : > { %2845 = vmatpush1.bf16.msra.mxu1 %v4689_v35 }
 0x2e5   : > { %2846 = vmatprep.subr.bf16.mxu1 %v4694_v9 }
 0x2e8   : > { %2847 = vmatpush1.bf16.msra.mxu1 %v4692_v36 }
 0x2e9   : > { %2848 = vmatprep.subr.bf16.mxu1 %v4697_v3 }
 0x2ec   : > { %2849 = vmatpush1.bf16.msra.mxu1 %v4695_v30 }
 0x2ed   : > { %2850 = vmatprep.subr.bf16.mxu1 %v4700_v10 }
 0x2f0   : > { %2851 = vmatpush1.bf16.msra.mxu1 %v4698_v13 }
 0x2f3   : > { %2853 = vmatmul.mubr.bf16.vlgmr.msra.gmra.mrb[4].mxu1 %v5372_v21 }
 0x345   : > { %v2682_v11 = vpop.f32.mrb[16].mxu0 }
 0x346   : > { %v5395_v21 = vadd.f32 %v2682_v11, %v2554_v37  ;;  %v2684_v41 = vpop.f32.mrb[17].mxu0 }
 0x347   : > { %v5397_v45 = vadd.f32 %v2684_v41, %v2556_v40  ;;  %v2686_v14 = vpop.f32.mrb[18].mxu0  ;;  %v4725_v41 = vld [vmem:[#allocation4 + $0x80] ss:$8 sps:$4 sm:$0xff]  }
 0x348   : > { %v5399_v22 = vadd.f32 %v2686_v14, %v2558_v48  ;;  %v2688_v32 = vpop.f32.mrb[19].mxu0  ;;  %v2875_v38 = vmul.f32 %v5395_v21, %v5395_v21  ;;  %v4728_v14 = vld [vmem:[#allocation4 + $0x90] ss:$8 sps:$4 sm:$0xff]  }
 0x349   : > { %v5401_v2 = vadd.f32 %v2688_v32, %v2560_v12  ;;  %v2876_v57 = vmul.f32 %v5397_v45, %v5397_v45  ;;  %v2863_v0 = vadd.f32 %v5397_v45, %v5395_v21  ;;  %v4727_v12 = vld [vmem:[#allocation4 + $0x84] ss:$8 sps:$4 sm:$0xff]   ;;  %v4730_v32 = vld [vmem:[#allocation4 + $0x94] ss:$8 sps:$4 sm:$0xff]  }
 0x34a   : > { %v2879_v33 = vmul.f32 %v5399_v22, %v5399_v22  ;;  %3438 = vmatprep.subr.bf16.mxu0 %v4727_v12 }
 0x34b   : > { %v2880_v58 = vmul.f32 %v5401_v2, %v5401_v2  ;;  %v2868_v25 = vadd.f32 %v5401_v2, %v5399_v22  ;;  %v2883_v36 = vadd.f32 %v2876_v57, %v2875_v38  ;;  %3439 = vmatpush1.bf16.msra.mxu0 %v4725_v41 }
 0x34c   : > { %3440 = vmatprep.subr.bf16.mxu0 %v4730_v32 }
 0x34d   : > { %v2888_v10 = vadd.f32 %v2880_v58, %v2879_v33 }
 0x34f   : > { %3441 = vmatpush1.bf16.msra.mxu0 %v4728_v14 }
 0x350   : > { %3442 = vmatprep.subr.bf16.mxu0 %v4733_v42 }
 0x353   : > { %3443 = vmatpush1.bf16.msra.mxu0 %v4731_v16 }
 0x354   : > { %3444 = vmatprep.subr.bf16.mxu0 %v4736_v63 }
 0x357   : > { %3445 = vmatpush1.bf16.msra.mxu0 %v4734_v18 }
 0x358   : > { %3446 = vmatprep.subr.bf16.mxu0 %v4739_v24 }
 0x35b   : > { %3447 = vmatpush1.bf16.msra.mxu0 %v4737_v27 }
 0x35c   : > { %3448 = vmatprep.subr.bf16.mxu0 %v4742_v46 }
 0x35f   : > { %3449 = vmatpush1.bf16.msra.mxu0 %v4740_v15 }
 0x360   : > { %3450 = vmatprep.subr.bf16.mxu0 %v4745_v17 }
 0x363   : > { %3451 = vmatpush1.bf16.msra.mxu0 %v4743_v6 }
 0x364   : > { %3452 = vmatprep.subr.bf16.mxu0 %v4748_v31 }
 0x367   : > { %3453 = vmatpush1.bf16.msra.mxu0 %v4746_v34 }
 0x368   : > { %3465 = vmatprep.subr.bf16.mxu0 %v4751_v50 }
 0x3c6   : > { %v2854_v39 = vpop.f32.mrb[4].mxu1 }
 0x3c7   : > { %v5424_v20 = vadd.f32 %v2854_v39, %v1234_v61  ;;  %v2856_v8 = vpop.f32.mrb[5].mxu1 }
 0x3c8   : > { %v5428_v62 = vadd.f32 %v2856_v8, %v1238_v1  ;;  %v2858_v43 = vpop.f32.mrb[6].mxu1 }
 0x3c9   : > { %v2877_v23 = vmul.f32 %v5424_v20, %v5424_v20  ;;  %v5432_v7 = vadd.f32 %v2858_v43, %v1234_v61  ;;  %v2860_v35 = vpop.f32.mrb[7].mxu1  ;;  %v2864_v9 = vadd.f32 %v5424_v20, %v2863_v0  ;;  %v2970_v43 = vrot.slane %v5387_v26, %v5227_v55 }
 0x3ca   : > { %v5435_v3 = vadd.f32 %v2860_v35, %v1238_v1  ;;  %v2878_v30 = vmul.f32 %v5428_v62, %v5428_v62  ;;  %v2934_v35 = vrot.slane %v5406_v28, %v5224_v54 }
 0x3cb   : > { %v2881_v13 = vmul.f32 %v5432_v7, %v5432_v7  ;;  %v2865_v29 = vadd.f32 %v5428_v62, %v2864_v9  ;;  %v2869_v44 = vadd.f32 %v5432_v7, %v2868_v25  ;;  %v2884_v19 = vadd.f32 %v2883_v36, %v2877_v23 }
 0x3cc   : > { %v2882_v37 = vmul.f32 %v5435_v3, %v5435_v3  ;;  %v2926_v25 = vrot.slane %v5387_v26, %v5224_v54  ;;  %v2922_v23 = vrot.slane %v5387_v26, %v5217_v47  ;;  %v2966_v9 = vrot.slane %v5387_v26, %v5230_v56 }
 0x3cd   : > { %2866 = vadd.xlane.f32.xlu0 %v2865_v29  ;;  %v2870_v53 = vadd.f32 %v5435_v3, %v2869_v44  ;;  %v2889_v40 = vadd.f32 %v2888_v10, %v2881_v13  ;;  %v2885_v11 = vadd.f32 %v2884_v19, %v2878_v30  ;;  %v2930_v36 = vrot.slane %v5406_v28, %v5217_v47 }
 0x3ce   : > { %v2946_v30 = vrot.slane %v2926_v25, %v5217_v47  ;;  %v2990_v10 = vrot.slane %v2970_v43, %v5230_v56  ;;  %v2942_v13 = vrot.slane %v2922_v23, %v5217_v47  ;;  %v2954_v29 = vrot.slane %v2934_v35, %v5217_v47  ;;  %v4749_v25 = vld [vmem:[#allocation4 + $0x100] ss:$8 sps:$4 sm:$0xff]   ;;  %v4754_v35 = vld [vmem:[#allocation4 + $0x114] ss:$8 sps:$4 sm:$0xff]  }
 0x3cf   : > { %2871 = vadd.xlane.f32.xlu1 %v2870_v53  ;;  %v2890_v48 = vadd.f32 %v2889_v40, %v2882_v37  ;;  %v2978_v44 = vrot.slane %v5406_v28, %v5227_v55  ;;  %v2974_v19 = vrot.slane %v5406_v28, %v5230_v56  ;;  %v2986_v12 = vrot.slane %v2966_v9, %v5230_v56 }
 0x3d0   : > { %v2950_v14 = vrot.slane %v2930_v36, %v5217_v47 }
 0x3d1   : > { %2886 = vadd.xlane.f32.xlu0 %v2885_v11  ;;  %v2994_v63 = vrot.slane %v2974_v19, %v5230_v56  ;;  %v4763_v19 = vld [vmem:[#allocation4 + $0x144] ss:$8 sps:$4 sm:$0xff]  }
 0x3d3   : > { %2891 = vadd.xlane.f32.xlu1 %v2890_v48 }
 0x45a   : > { %v2867_v51 = vpop.xlane.xlu0 %2866 }
 0x45b   : > { %v2873_v52 = vmul.f32 0.001953125, %v2867_v51 }
 0x45c   : > { %v2872_v59 = vpop.xlane.xlu1 %2871 }
 0x45d   : > { %v2874_v60 = vmul.f32 0.001953125, %v2872_v59  ;;  %v2895_v61 = vmul.f32 %v2873_v52, %v2873_v52  ;;  %v2899_v53 = vsub.f32 %v5395_v21, %v2873_v52  ;;  %v2901_v26 = vsub.f32 %v5424_v20, %v2873_v52 }
 0x45e   : > { %v2887_v49 = vpop.xlane.xlu0 %2886  ;;  %v2900_v37 = vsub.f32 %v5397_v45, %v2873_v52  ;;  %v2902_v40 = vsub.f32 %v5428_v62, %v2873_v52  ;;  %v2998_v62 = vrot.slane %v2978_v44, %v5230_v56  ;;  %v4758_v44 = vld [vmem:[#allocation4 + $0x130] ss:$8 sps:$4 sm:$0xff]  }
 0x45f   : > { %v2893_v1 = vmul.f32 0.001953125, %v2887_v49  ;;  %v2896_v33 = vmul.f32 %v2874_v60, %v2874_v60  ;;  %v2903_v48 = vsub.f32 %v5399_v22, %v2874_v60  ;;  %v2904_v41 = vsub.f32 %v5401_v2, %v2874_v60 }
 0x460   : > { %v2892_v38 = vpop.xlane.xlu1 %2891  ;;  %v2905_v20 = vsub.f32 %v5432_v7, %v2874_v60  ;;  %v2906_v45 = vsub.f32 %v5435_v3, %v2874_v60 }
 0x461   : > { %v2897_v57 = vsub.f32 %v2893_v1, %v2895_v61  ;;  %v2894_v58 = vmul.f32 0.001953125, %v2892_v38 }
 0x463   : > { %v2907_v39 = vadd.f32 1e-05, %v2897_v57  ;;  %v2898_v0 = vsub.f32 %v2894_v58, %v2896_v33 }
 0x465   : > { %4817 = vrsqrt.f32 %v2907_v39  ;;  %v2908_v8 = vadd.f32 1e-05, %v2898_v0 }
 0x467   : > { %4819 = vrsqrt.f32 %v2908_v8 }
 0x46f   : > { %v4818_v11 = vpop.eup %4817 }
 0x470   : > { %v2912_v32 = vmul.f32 %v4818_v11, %v2900_v37  ;;  %v2911_v42 = vmul.f32 %v4818_v11, %v2899_v53  ;;  %v2914_v28 = vmul.f32 %v4818_v11, %v2902_v40  ;;  %v2913_v16 = vmul.f32 %v4818_v11, %v2901_v26  ;;  %v4761_v53 = vld [vmem:[#allocation4 + $0x140] ss:$8 sps:$4 sm:$0xff]   ;;  %v4766_v26 = vld [vmem:[#allocation4 + $0x154] ss:$8 sps:$4 sm:$0xff]   ;;  %v4764_v37 = vld [vmem:[#allocation4 + $0x150] ss:$8 sps:$4 sm:$0xff]  }
 0x471   : > { %v4820_v21 = vpop.eup %4819  ;;  %v4769_v40 = vld [vmem:[#allocation4 + $0x164] ss:$8 sps:$4 sm:$0xff]   ;;  %v4767_v11 = vld [vmem:[#allocation4 + $0x160] ss:$8 sps:$4 sm:$0xff]  }
 0x472   : > { %v2916_v22 = vmul.f32 %v4820_v21, %v2904_v41  ;;  %v2956_v18 = vmul.f32 %v2946_v30, %v2912_v32  ;;  %v2915_v2 = vmul.f32 %v4820_v21, %v2903_v48  ;;  %v2955_v24 = vmul.f32 %v2942_v13, %v2911_v42  ;;  %v4772_v48 = vld [vmem:[#allocation4 + $0x174] ss:$8 sps:$4 sm:$0xff]   ;;  %v4770_v41 = vld [vmem:[#allocation4 + $0x170] ss:$8 sps:$4 sm:$0xff]  }
 0x473   : > { %v2918_v27 = vmul.f32 %v4820_v21, %v2906_v45  ;;  %v2958_v46 = vmul.f32 %v2954_v29, %v2914_v28  ;;  %v2917_v15 = vmul.f32 %v4820_v21, %v2905_v20  ;;  %v2957_v17 = vmul.f32 %v2950_v14, %v2913_v16  ;;  %v4778_v32 = vld [vmem:[#allocation4 + $0x194] ss:$8 sps:$4 sm:$0xff]   ;;  %v4776_v42 = vld [vmem:[#allocation4 + $0x190] ss:$8 sps:$4 sm:$0xff]   ;;  %v4781_v28 = vld [vmem:[#allocation4 + $0x1a4] ss:$8 sps:$4 sm:$0xff]  }
 0x474   : > { %v2960_v6 = vmul.f32 %v2946_v30, %v2916_v22  ;;  %v3000_v31 = vadd.f32 %v2990_v10, %v2956_v18  ;;  %v2959_v34 = vmul.f32 %v2942_v13, %v2915_v2  ;;  %v2999_v50 = vadd.f32 %v2986_v12, %v2955_v24  ;;  %v4752_v30 = vld [vmem:[#allocation4 + $0x110] ss:$8 sps:$4 sm:$0xff]   ;;  %v4755_v13 = vld [vmem:[#allocation4 + $0x120] ss:$8 sps:$4 sm:$0xff]   ;;  %v4784_v21 = vld [vmem:[#allocation4 + $0x1b4] ss:$8 sps:$4 sm:$0xff]  }
 0x475   : > { %v2962_v51 = vmul.f32 %v2954_v29, %v2918_v27  ;;  %v2961_v7 = vmul.f32 %v2950_v14, %v2917_v15  ;;  %v3001_v52 = vadd.f32 %v2994_v63, %v2957_v17  ;;  %v3002_v60 = vadd.f32 %v2998_v62, %v2958_v46  ;;  %v4760_v29 = vld [vmem:[#allocation4 + $0x134] ss:$8 sps:$4 sm:$0xff]   ;;  %v4773_v14 = vld [vmem:[#allocation4 + $0x180] ss:$8 sps:$4 sm:$0xff]   ;;  %v4782_v20 = vld [vmem:[#allocation4 + $0x1b0] ss:$8 sps:$4 sm:$0xff]  }
 0x476   : > { %v3004_v3 = vadd.f32 %v2990_v10, %v2960_v6  ;;  %v3003_v59 = vadd.f32 %v2986_v12, %v2959_v34  ;;  %v3008_v1 = vmax.f32 %v3000_v31, 0.0  ;;  %v3007_v57 = vmax.f32 %v2999_v50, 0.0  ;;  %v4757_v10 = vld [vmem:[#allocation4 + $0x124] ss:$8 sps:$4 sm:$0xff]   ;;  %v4779_v16 = vld [vmem:[#allocation4 + $0x1a0] ss:$8 sps:$4 sm:$0xff]  }
 0x477   : > { %v3006_v49 = vadd.f32 %v2998_v62, %v2962_v51  ;;  %v3005_v61 = vadd.f32 %v2994_v63, %v2961_v7  ;;  %v3009_v39 = vmax.f32 %v3001_v52, 0.0  ;;  %v3010_v23 = vmax.f32 %v3002_v60, 0.0  ;;  %v4775_v12 = vld [vmem:[#allocation4 + $0x184] ss:$8 sps:$4 sm:$0xff]   ;;  %v4785_v62 = vld [vmem:[#allocation4 + $0x1c0] ss:$8 sps:$4 sm:$0xff]  }
 0x478   : > { %v3012_v38 = vmax.f32 %v3004_v3, 0.0  ;;  %v3011_v33 = vmax.f32 %v3003_v59, 0.0  ;;  %v4787_v45 = vld [vmem:[#allocation4 + $0x1c4] ss:$8 sps:$4 sm:$0xff]   ;;  %v4790_v63 = vld [vmem:[#allocation4 + $0x1d4] ss:$8 sps:$4 sm:$0xff]  }
 0x479   : > { %v3014_v58 = vmax.f32 %v3006_v49, 0.0  ;;  %v3013_v0 = vmax.f32 %v3005_v61, 0.0  ;;  %v4788_v22 = vld [vmem:[#allocation4 + $0x1d0] ss:$8 sps:$4 sm:$0xff]   ;;  %v4793_v18 = vld [vmem:[#allocation4 + $0x1e4] ss:$8 sps:$4 sm:$0xff]  }
 0x47a   : > { %v3016_v8 = vpack.c.bf16 %v3012_v38, %v3008_v1  ;;  %v3015_v43 = vpack.c.bf16 %v3011_v33, %v3007_v57  ;;  %v4791_v2 = vld [vmem:[#allocation4 + $0x1e0] ss:$8 sps:$4 sm:$0xff]   ;;  %v4796_v24 = vld [vmem:[#allocation4 + $0x1f4] ss:$8 sps:$4 sm:$0xff]   ;;  %v4794_v27 = vld [vmem:[#allocation4 + $0x1f0] ss:$8 sps:$4 sm:$0xff]  }
 0x47b   : > { %v5478_v9 = vpack.c.bf16 %v3013_v0, %v3009_v39  ;;  %v3018_v36 = vpack.c.bf16 %v3014_v58, %v3010_v23  ;;  %v5484_v46 = vld [vmem:[%s5592_s5 + $0x30] sm:$0x77]  ;;  %v4797_v39 = vld [vmem:[%s5591_s4 + $0x40] sm:$0xff]  }
 0x47c   : > { %3454 = vmatprep.mubr.bf16.mxu0 %v3016_v8  ;;  %v3087_v15 = vrot.slane %v5484_v46, %v5087_v4  ;;  %v3091_v17 = vrot.slane %v5484_v46, %v5090_v5  ;;  %v4798_v0 = vld [vmem:[%s5591_s4] sm:$0xff]   ;;  %4220 = vmatprep.subr.bf16.mxu1 %v4797_v39  ;;  %v4799_v8 = vld [vmem:[%s5591_s4 + $0x48] sm:$0xff]   ;;  %v4802_v23 = vld [vmem:[%s5591_s4 + $0x10] sm:$0xff]  }
 0x47d   : > { %3455 = vmatmul.mubr.bf16.vlgmr.msra.gmra.mrb[20].mxu0 %v3015_v43  ;;  %4221 = vmatpush3.bf16.msra.mxu1 %v4798_v0  ;;  %v4801_v43 = vld [vmem:[%s5591_s4 + $0x50] sm:$0xff]  }
 0x47e   : > { %3466 = vmatpush1.bf16.msra.mxu0 %v4749_v25  ;;  %3497 = vmatprep.mubr.bf16.mxu0 %v3018_v36  ;;  %v3097_v6 = vrot.slane %v3087_v15, %v5087_v4  ;;  %v3101_v31 = vrot.slane %v3091_v17, %v5087_v4  ;;  %v4800_v25 = vld [vmem:[%s5591_s4 + $0x8] sm:$0xff]   ;;  %v4805_v36 = vld [vmem:[%s5591_s4 + $0x60] sm:$0xff]  }
 0x47f   : > { %3467 = vmatprep.subr.bf16.mxu0 %v4754_v35  ;;  %4222 = vmatprep.subr.bf16.mxu1 %v4799_v8  ;;  %v4803_v35 = vld [vmem:[%s5591_s4 + $0x58] sm:$0xff]  }
 0x481   : > { %4223 = vmatpush3.bf16.msra.mxu1 %v4800_v25 }
 0x482   : > { %3468 = vmatpush1.bf16.msra.mxu0 %v4752_v30  ;;  %4224 = vmatprep.subr.bf16.mxu1 %v4801_v43  ;;  %v4806_v30 = vld [vmem:[%s5591_s4 + $0x20] sm:$0xff]  }
 0x483   : > { %3469 = vmatprep.subr.bf16.mxu0 %v4757_v10  ;;  %v4807_v10 = vld [vmem:[%s5591_s4 + $0x68] sm:$0xff]  }
 0x485   : > { %4225 = vmatpush3.bf16.msra.mxu1 %v4802_v23 }
 0x486   : > { %3470 = vmatpush1.bf16.msra.mxu0 %v4755_v13  ;;  %4226 = vmatprep.subr.bf16.mxu1 %v4803_v35  ;;  %v4808_v13 = vld [vmem:[%s5591_s4 + $0x28] sm:$0xff]  }
 0x487   : > { %3471 = vmatprep.subr.bf16.mxu0 %v4760_v29  ;;  %v4809_v29 = vld [vmem:[%s5591_s4 + $0x70] sm:$0xff]  }
 0x48a   : > { %3472 = vmatpush1.bf16.msra.mxu0 %v4758_v44  ;;  %v4810_v44 = vld [vmem:[%s5591_s4 + $0x30] sm:$0xff]  }
 0x48b   : > { %3473 = vmatprep.subr.bf16.mxu0 %v4763_v19  ;;  %v4811_v19 = vld [vmem:[%s5591_s4 + $0x78] sm:$0xff]  }
 0x48e   : > { %3474 = vmatpush1.bf16.msra.mxu0 %v4761_v53  ;;  %v4812_v53 = vld [vmem:[%s5591_s4 + $0x38] sm:$0xff]  }
 0x48f   : > { %3475 = vmatprep.subr.bf16.mxu0 %v4766_v26 }
 0x492   : > { %3476 = vmatpush1.bf16.msra.mxu0 %v4764_v37 }
 0x493   : > { %3477 = vmatprep.subr.bf16.mxu0 %v4769_v40 }
 0x496   : > { %3478 = vmatpush1.bf16.msra.mxu0 %v4767_v11 }
 0x497   : > { %3479 = vmatprep.subr.bf16.mxu0 %v4772_v48 }
 0x49a   : > { %3480 = vmatpush1.bf16.msra.mxu0 %v4770_v41 }
 0x49b   : > { %3481 = vmatprep.subr.bf16.mxu0 %v4775_v12 }
 0x49e   : > { %3482 = vmatpush1.bf16.msra.mxu0 %v4773_v14 }
 0x49f   : > { %3483 = vmatprep.subr.bf16.mxu0 %v4778_v32 }
 0x4a2   : > { %3484 = vmatpush1.bf16.msra.mxu0 %v4776_v42 }
 0x4a3   : > { %3485 = vmatprep.subr.bf16.mxu0 %v4781_v28 }
 0x4a6   : > { %3486 = vmatpush1.bf16.msra.mxu0 %v4779_v16 }
 0x4a7   : > { %3487 = vmatprep.subr.bf16.mxu0 %v4784_v21 }
 0x4aa   : > { %3488 = vmatpush1.bf16.msra.mxu0 %v4782_v20 }
 0x4ab   : > { %3489 = vmatprep.subr.bf16.mxu0 %v4787_v45  ;;  %v3551_v45 = vrot.slane %v5484_v46, %v5224_v54 }
 0x4ae   : > { %3490 = vmatpush1.bf16.msra.mxu0 %v4785_v62  ;;  %v3547_v62 = vrot.slane %v5484_v46, %v5217_v47 }
 0x4af   : > { %3491 = vmatprep.subr.bf16.mxu0 %v4790_v63  ;;  %v3573_v63 = vrot.slane %v5484_v46, %v5227_v55 }
 0x4b1   : > { %v3583_v54 = vrot.slane %v3573_v63, %v5230_v56 }
 0x4b2   : > { %3492 = vmatpush1.bf16.msra.mxu0 %v4788_v22  ;;  %v3569_v22 = vrot.slane %v5484_v46, %v5230_v56 }
 0x4b3   : > { %3493 = vmatprep.subr.bf16.mxu0 %v4793_v18 }
 0x4b4   : > { %v3579_v17 = vrot.slane %v3569_v22, %v5230_v56 }
 0x4b6   : > { %3494 = vmatpush1.bf16.msra.mxu0 %v4791_v2 }
 0x4b7   : > { %3495 = vmatprep.subr.bf16.mxu0 %v4796_v24  ;;  %v3561_v24 = vrot.slane %v3551_v45, %v5217_v47 }
 0x4ba   : > { %3496 = vmatpush1.bf16.msra.mxu0 %v4794_v27  ;;  %v3557_v27 = vrot.slane %v3547_v62, %v5217_v47 }
 0x4bd   : > { %3498 = vmatmul.mubr.bf16.vlgmr.msra.gmra.mrb[20].mxu0 %v5478_v9  ;;  %v4804_v9 = vld [vmem:[%s5591_s4 + $0x18] sm:$0xff]  }
 0x4be   : > { %4227 = vmatpush3.bf16.msra.mxu1 %v4804_v9 }
 0x4bf   : > { %4228 = vmatprep.subr.bf16.mxu1 %v4805_v36 }
 0x4c2   : > { %4229 = vmatpush3.bf16.msra.mxu1 %v4806_v30 }
 0x4c3   : > { %4230 = vmatprep.subr.bf16.mxu1 %v4807_v10 }
 0x4c6   : > { %4231 = vmatpush3.bf16.msra.mxu1 %v4808_v13 }
 0x4c7   : > { %4232 = vmatprep.subr.bf16.mxu1 %v4809_v29 }
 0x4ca   : > { %4233 = vmatpush3.bf16.msra.mxu1 %v4810_v44 }
 0x4cb   : > { %4234 = vmatprep.subr.bf16.mxu1 %v4811_v19 }
 0x4ce   : > { %4235 = vmatpush3.bf16.msra.mxu1 %v4812_v53 }
 0x590   : > { %v3499_v34 = vpop.f32.mrb[20].mxu0 }
 0x591   : > { %v5492_v50 = vadd.f32 %v3499_v34, %v3097_v6  ;;  %v3501_v51 = vpop.f32.mrb[21].mxu0 }
 0x592   : > { %v5494_v7 = vadd.f32 %v3501_v51, %v3101_v31  ;;  %v3503_v52 = vpop.f32.mrb[22].mxu0 }
 0x593   : > { %v5496_v3 = vadd.f32 %v3503_v52, %v3097_v6  ;;  %v3505_v59 = vpop.f32.mrb[23].mxu0  ;;  %v3516_v5 = vmul.f32 %v5492_v50, %v5492_v50 }
 0x594   : > { %v5498_v60 = vadd.f32 %v3505_v59, %v3101_v31  ;;  %v3508_v49 = vadd.f32 %v5494_v7, %v5492_v50  ;;  %v3517_v61 = vmul.f32 %v5494_v7, %v5494_v7 }
 0x595   : > { %v3518_v38 = vmul.f32 %v5496_v3, %v5496_v3 }
 0x596   : > { %3509 = vadd.xlane.f32.xlu0 %v3508_v49  ;;  %v3511_v1 = vadd.f32 %v5498_v60, %v5496_v3  ;;  %v3519_v57 = vmul.f32 %v5498_v60, %v5498_v60  ;;  %v3520_v33 = vadd.f32 %v3517_v61, %v3516_v5 }
 0x598   : > { %3512 = vadd.xlane.f32.xlu1 %v3511_v1  ;;  %v3523_v58 = vadd.f32 %v3519_v57, %v3518_v38 }
 0x59a   : > { %3521 = vadd.xlane.f32.xlu0 %v3520_v33 }
 0x59c   : > { %3524 = vadd.xlane.f32.xlu1 %v3523_v58  ;;  %v293_v58 = vld [vmem:[%s5592_s5 + $0x38] sm:$0x7] }
 0x59d   : > { %v3629_v0 = vrot.slane %v293_v58, %v5087_v4 }
 0x623   : > { %v3510_v26 = vpop.xlane.xlu0 %3509 }
 0x624   : > { %v3514_v37 = vmul.f32 0.00390625, %v3510_v26 }
 0x625   : > { %v3513_v40 = vpop.xlane.xlu1 %3512 }
 0x626   : > { %v3515_v11 = vmul.f32 0.00390625, %v3513_v40  ;;  %v3528_v41 = vmul.f32 %v3514_v37, %v3514_v37  ;;  %v3532_v18 = vsub.f32 %v5492_v50, %v3514_v37  ;;  %v3533_v2 = vsub.f32 %v5494_v7, %v3514_v37 }
 0x627   : > { %v3522_v48 = vpop.xlane.xlu0 %3521 }
 0x628   : > { %v3526_v12 = vmul.f32 0.00390625, %v3522_v48  ;;  %v3529_v42 = vmul.f32 %v3515_v11, %v3515_v11  ;;  %v3534_v6 = vsub.f32 %v5496_v3, %v3515_v11  ;;  %v3535_v55 = vsub.f32 %v5498_v60, %v3515_v11 }
 0x629   : > { %v3525_v14 = vpop.xlane.xlu1 %3524 }
 0x62a   : > { %v3530_v32 = vsub.f32 %v3526_v12, %v3528_v41  ;;  %v3527_v28 = vmul.f32 0.00390625, %v3525_v14 }
 0x62c   : > { %v3536_v16 = vadd.f32 1e-05, %v3530_v32  ;;  %v3531_v21 = vsub.f32 %v3527_v28, %v3529_v42 }
 0x62e   : > { %4821 = vrsqrt.f32 %v3536_v16  ;;  %v3537_v20 = vadd.f32 1e-05, %v3531_v21 }
 0x630   : > { %4823 = vrsqrt.f32 %v3537_v20 }
 0x638   : > { %v4822_v15 = vpop.eup %4821 }
 0x639   : > { %v3540_v31 = vmul.f32 %v4822_v15, %v3532_v18  ;;  %v3541_v34 = vmul.f32 %v4822_v15, %v3533_v2 }
 0x63a   : > { %v4824_v46 = vpop.eup %4823 }
 0x63b   : > { %v3542_v51 = vmul.f32 %v4824_v46, %v3534_v6  ;;  %v3543_v50 = vmul.f32 %v4824_v46, %v3535_v55  ;;  %v3563_v52 = vmul.f32 %v3561_v24, %v3541_v34  ;;  %v3562_v7 = vmul.f32 %v3557_v27, %v3540_v31 }
 0x63d   : > { %v3565_v59 = vmul.f32 %v3561_v24, %v3543_v50  ;;  %v3585_v49 = vadd.f32 %v3583_v54, %v3563_v52  ;;  %v3564_v47 = vmul.f32 %v3557_v27, %v3542_v51  ;;  %v3584_v5 = vadd.f32 %v3579_v17, %v3562_v7 }
 0x63f   : > { %v3587_v61 = vadd.f32 %v3583_v54, %v3565_v59  ;;  %v3586_v1 = vadd.f32 %v3579_v17, %v3564_v47  ;;  %v3589_v38 = vmax.f32 %v3585_v49, 0.0  ;;  %v3588_v57 = vmax.f32 %v3584_v5, 0.0 }
 0x641   : > { %v3591_v56 = vmax.f32 %v3587_v61, 0.0  ;;  %v3590_v3 = vmax.f32 %v3586_v1, 0.0 }
 0x643   : > { %v3593_v33 = vpack.c.bf16 %v3591_v56, %v3589_v38  ;;  %v3592_v60 = vpack.c.bf16 %v3590_v3, %v3588_v57 }
 0x645   : > { %3758 = vmatprep.mubr.bf16.mxu1 %v3593_v33 }
 0x646   : > { %3759 = vmatmul.mubr.bf16.vlgmr.msra.gmra.mrb[8].mxu1 %v3592_v60 }
 0x719   : > { %v4236_v39 = vpop.f32.mrb[8].mxu1 }
 0x71a   : > { %v4237_v8 = vpop.f32.mrb[9].mxu1 }
 0x71b   : > { %v4238_v25 = vadd.f32 %v4237_v8, %v4236_v39  ;;  %v4239_v43 = vpop.f32.mrb[10].mxu1 }
 0x71c   : > { %v4240_v23 = vpop.f32.mrb[11].mxu1 }
 0x71d   : > { %v3761_v35 = vadd.f32 %v4238_v25, %v3629_v0  ;;  %v4241_v9 = vadd.f32 %v4240_v23, %v4239_v43 }
 0x71f   : > { %3768 = vst.msk [vmem:[%s283_s11] sm:$0xff] %vm3767_vm1, %v3761_v35  ;;  %v3764_v36 = vadd.f32 %v4241_v9, %v3629_v0 }
 0x721   : > { %3769 = vst.msk [vmem:[%s283_s11 + $0x8] sm:$0xff] %vm3767_vm1, %v3764_v36 }
 0x722 PF: > { %s18_s21 = sadd.s32 1, %s4895_s21  }
 0x723   : > { %p15_p2 = scmp.ge.s32.totalorder %s18_s21, 5  }
 0x725   :  { %17 = sbr.rel (!%p15_p2) target bundleno = 2 (0x2), region = 83 }
 0x72c   :  { %3792 = vsyncpa [#allocation3], 1 }
 0x72d   :  { %3794 = vsyncpa [#allocation3 + $0x1], 1 }
 0x72e   :  { %3795 = vsyncpa [#allocation5], 1 }

</bundles_post_ra>
